<compile_context>
chip_gen: v5e
topology: v5e:2x2
jax: 0.10.0
libtpu: 0.0.40
codegen_flags: <defaults>
</compile_context>

<pallas_src>
import jax
import jax.numpy as jnp
from jax.experimental import pallas as pl
from jax.experimental.pallas import tpu as pltpu


def _partial_u(h_ref, w_ref, b_ref):
    """One (B, n_tile, D) f32 partial of u for the current (n, s) tile."""
    batch, s_t, d = h_ref.shape
    n_t = w_ref.shape[1]

    # h tile in its native dtype; read once, reused by both matmuls.
    h = h_ref[...]                                            # (B, s_t, D)

    # --- Linear: one flattened 2-D MXU matmul ------------------------------
    # (B, s_t) merge / split is a layout no-op when s_t is a multiple of the
    # sublane packing (8 for f32), which the tile selection guarantees.
    logits = jnp.dot(h.reshape(batch * s_t, d), w_ref[...],
                     preferred_element_type=jnp.float32)
    logits = logits + b_ref[...].astype(jnp.float32)          # bias broadcast
    logits = logits.reshape(batch, s_t, n_t)                  # (B, s_t, N_t)

    # --- Softmax over the *batch* axis (dim=1 of the original layout) ------
    # Reduction over the leading axis is just elementwise work across slabs.
    m = jnp.max(logits, axis=0, keepdims=True)
    e = jnp.exp(logits - m)
    attn = e / jnp.sum(e, axis=0, keepdims=True)              # exact divide

    # --- u[b,n,d] += sum_s attn[b,s,n] * h[b,s,d] ---------------------------
    # Transpose only the small attn tile (in compute dtype) so the batched
    # matmul is in canonical (batch, M, K) x (batch, K, N) form.
    attn_t = jnp.swapaxes(attn.astype(h.dtype), 1, 2)         # (B, n_t, s_t)
    return jnp.einsum("bns,bsd->bnd", attn_t, h,
                      preferred_element_type=jnp.float32)     # (B, n_t, D)


def _kernel_direct(h_ref, w_ref, b_ref, u_ref):
    # f32 output (or a single S tile): accumulate straight into the resident
    # output block - it keeps the same block index across the inner S axis.
    part = _partial_u(h_ref, w_ref, b_ref)
    s_step = pl.program_id(1)

    @pl.when(s_step == 0)
    def _init():
        u_ref[...] = part.astype(u_ref.dtype)

    @pl.when(s_step > 0)
    def _accum():
        u_ref[...] += part.astype(u_ref.dtype)


def _kernel_scratch(h_ref, w_ref, b_ref, u_ref, acc_ref):
    # Non-f32 output with a multi-tile S reduction: f32 VMEM accumulator.
    part = _partial_u(h_ref, w_ref, b_ref)
    s_step = pl.program_id(1)

    @pl.when(s_step == 0)
    def _init():
        acc_ref[...] = part          # init with first partial (no zero pass)

    @pl.when(s_step > 0)
    def _accum():
        acc_ref[...] += part

    @pl.when(s_step == pl.num_programs(1) - 1)
    def _finalize():
        u_ref[...] = acc_ref[...].astype(u_ref.dtype)


def label_wise_attention(h, w, b, *, s_tile=None, n_tile=None,
                         vmem_budget_bytes=44 * 1024 * 1024):
    """h: (S, B, D); w: (D, N); b: (N,).  Returns u: (B, N, D)."""
    S, B, D = h.shape
    Dw, N = w.shape
    assert Dw == D and b.shape == (N,)

    out_dtype = h.dtype
    h_item = h.dtype.itemsize
    w_item = w.dtype.itemsize
    o_item = jnp.dtype(out_dtype).itemsize
    scratch_maybe = out_dtype != jnp.float32

    def vmem_bytes(st, nt):
        h_blk = st * B * D * h_item
        w_blk = D * nt * w_item
        b_blk = 8 * nt * 4
        u_blk = B * nt * D * o_item
        acc = (B * nt * D * 4) if scratch_maybe else 0
        interm = 4 * st * B * nt * 4 + B * nt * D * 4     # logits/exp/attn/part
        return 2 * (h_blk + w_blk + b_blk + u_blk) + acc + interm

    # --- Label tile: fill the 256-wide MXU, keep >=2 tiles for megacore ----
    if n_tile is None:
        if N % 128 != 0:
            n_tile = N
        elif N % 256 == 0 and N // 256 >= 2:
            n_tile = 256
        elif N // 128 >= 2:
            n_tile = 128
        else:
            n_tile = N
        while (n_tile > 128 and n_tile % 256 == 0
               and vmem_bytes(8, n_tile) > vmem_budget_bytes):
            n_tile //= 2
    assert N % n_tile == 0, "n_tile must divide N"
    assert n_tile == N or n_tile % 128 == 0, "label tile must be 128-lane aligned"

    # --- Sequence tile: largest divisor of S that fits the VMEM budget -----
    # s_tile is the contraction K of the second matmul; bigger tiles mean a
    # better-fed MXU and fewer accumulator read-modify-writes.
    if s_tile is None:
        cands = sorted({c for c in (8, 16, 32, 64, 128, 256, 512)
                        if c < S and S % c == 0} | {S}, reverse=True)
        s_tile = cands[-1]
        for c in cands:
            if vmem_bytes(c, n_tile) <= vmem_budget_bytes:
                s_tile = c
                break
    assert S % s_tile == 0, "s_tile must divide S"
    assert s_tile == S or s_tile % 8 == 0, "seq tile must be 8-sublane aligned"

    num_n = N // n_tile
    num_s = S // s_tile
    use_scratch = scratch_maybe and num_s > 1

    # (B, S, D)-major view of h (single XLA transpose outside the kernel) so
    # all in-kernel contractions are MXU-native without relayouting h.
    h_bsd = jnp.transpose(h, (1, 0, 2))
    b2d = b.reshape(1, N)

    kernel = _kernel_scratch if use_scratch else _kernel_direct
    scratch_shapes = ([pltpu.VMEM((B, n_tile, D), jnp.float32)]
                      if use_scratch else [])

    vmem_limit = min(max(int(vmem_bytes(s_tile, n_tile) * 1.5), 32 << 20)
                     + (8 << 20), 64 << 20)

    return pl.pallas_call(
        kernel,
        out_shape=jax.ShapeDtypeStruct((B, N, D), out_dtype),
        grid_spec=pltpu.PrefetchScalarGridSpec(
            num_scalar_prefetch=0,
            grid=(num_n, num_s),   # labels (parallel) outer, seq (reduction) inner
            in_specs=[
                pl.BlockSpec((B, s_tile, D), lambda n, s: (0, s, 0)),
                pl.BlockSpec((D, n_tile), lambda n, s: (0, n)),
                pl.BlockSpec((1, n_tile), lambda n, s: (0, n)),
            ],
            out_specs=pl.BlockSpec((B, n_tile, D), lambda n, s: (0, n, 0)),
            scratch_shapes=scratch_shapes,
        ),
        compiler_params=pltpu.CompilerParams(
            dimension_semantics=("parallel", "arbitrary"),
            vmem_limit_bytes=vmem_limit,
        ),
    )(h_bsd, w, b2d)


def reference(h, w, b):
    logits = jnp.einsum("sbd,dn->sbn", h, w) + b
    attn = jax.nn.softmax(logits, axis=1)          # dim=1 == batch axis
    return jnp.einsum("sbd,sbn->bnd", h, attn)


if __name__ == "__main__":
    # seq, batch, d_model, n_labels - small but 128-aligned so the kernel
    # exercises lane-dense stores and both accumulation paths.
    S, B, D, N = 32, 8, 128, 256

    key = jax.random.PRNGKey(0)
    k_h, k_w, k_b = jax.random.split(key, 3)

    h = jax.random.normal(k_h, (S, B, D), dtype=jnp.float32)
    # Deterministic init mimicking nn.Linear defaults: U(-1/sqrt(D), 1/sqrt(D)).
    bound = 1.0 / (D ** 0.5)
    w = jax.random.uniform(k_w, (D, N), minval=-bound, maxval=bound,
                           dtype=jnp.float32)
    b = jax.random.uniform(k_b, (N,), minval=-bound, maxval=bound,
                           dtype=jnp.float32)

    u_ref = reference(h, w, b)

    # 1) Auto tiling: picks s_tile=S (single S tile) and n_tile=128 here.
    u_auto = jax.block_until_ready(label_wise_attention(h, w, b))
    # 2) Explicit small tiles: exercises the pipelined (2 x 4) grid with the
    #    resident-output accumulation over the S reduction axis.
    u_tiled = jax.block_until_ready(
        label_wise_attention(h, w, b, s_tile=8, n_tile=128))

    for name, u in (("auto", u_auto), ("tiled", u_tiled)):
        assert u.shape == (B, N, D)
        err = jnp.max(jnp.abs(u - u_ref))
        assert jnp.allclose(u, u_ref, atol=2e-3, rtol=2e-3), (
            f"{name}: max abs err {err}")

    print("KERNEL_OK")
</pallas_src>

<mosaic_0001>
module attributes {stable_mosaic.version = 11 : i64} {
  func.func @_kernel_direct(%arg0: i32, %arg1: i32, %arg2: memref<8x32x128xf32, #tpu.memory_space<vmem>>, %arg3: memref<128x128xf32, #tpu.memory_space<vmem>>, %arg4: memref<1x128xf32, #tpu.memory_space<vmem>>, %arg5: memref<8x128x128xf32, #tpu.memory_space<vmem>>) attributes {dimension_semantics = [#tpu.dimension_semantics<parallel>, #tpu.dimension_semantics<arbitrary>], iteration_bounds = array<i64: 2, 1>, scalar_prefetch = 0 : i64, scratch_operands = 0 : i64, tpu.core_type = #tpu.core_type<tc>, window_params = [{transform_indices = @transform_0, window_bounds = array<i64: 8, 32, 128>}, {transform_indices = @transform_1, window_bounds = array<i64: 128, 128>}, {transform_indices = @transform_2, window_bounds = array<i64: 1, 128>}, {transform_indices = @transform_3, window_bounds = array<i64: 8, 128, 128>}]} {
    %c0 = arith.constant 0 : index
    %c0_0 = arith.constant 0 : index
    %c0_1 = arith.constant 0 : index
    %0 = vector.load %arg2[%c0, %c0_0, %c0_1] : memref<8x32x128xf32, #tpu.memory_space<vmem>>, vector<8x32x128xf32>
    %1 = vector.shape_cast %0 : vector<8x32x128xf32> to vector<256x128xf32>
    %c0_2 = arith.constant 0 : index
    %c0_3 = arith.constant 0 : index
    %2 = vector.load %arg3[%c0_2, %c0_3] : memref<128x128xf32, #tpu.memory_space<vmem>>, vector<128x128xf32>
    %cst = arith.constant dense<0.000000e+00> : vector<256x128xf32>
    %3 = tpu.matmul %1, %2, %cst {dimension_numbers = #tpu.dot_dimension_numbers<[1], [0], [0], [1], [0, 0, 1, 1], [], []>} : vector<256x128xf32>, vector<128x128xf32>, vector<256x128xf32> -> vector<256x128xf32>
    %c0_4 = arith.constant 0 : index
    %c0_5 = arith.constant 0 : index
    %4 = vector.load %arg4[%c0_4, %c0_5] : memref<1x128xf32, #tpu.memory_space<vmem>>, vector<1x128xf32>
    %5 = vector.broadcast %4 : vector<1x128xf32> to vector<256x128xf32>
    %6 = arith.addf %3, %5 : vector<256x128xf32>
    %7 = vector.shape_cast %6 : vector<256x128xf32> to vector<8x32x128xf32>
    %cst_6 = arith.constant dense<0xFF800000> : vector<32x128xf32>
    %8 = vector.multi_reduction <maximumf>, %7, %cst_6 [0] : vector<8x32x128xf32> to vector<32x128xf32>
    %9 = vector.shape_cast %8 : vector<32x128xf32> to vector<1x32x128xf32>
    %10 = vector.broadcast %9 : vector<1x32x128xf32> to vector<8x32x128xf32>
    %11 = arith.subf %7, %10 : vector<8x32x128xf32>
    %12 = math.exp %11 : vector<8x32x128xf32>
    %cst_7 = arith.constant dense<0.000000e+00> : vector<32x128xf32>
    %13 = vector.multi_reduction <add>, %12, %cst_7 [0] : vector<8x32x128xf32> to vector<32x128xf32>
    %14 = vector.shape_cast %13 : vector<32x128xf32> to vector<1x32x128xf32>
    %15 = vector.broadcast %14 : vector<1x32x128xf32> to vector<8x32x128xf32>
    %16 = arith.divf %12, %15 : vector<8x32x128xf32>
    %17 = tpu.transpose %16, [0, 2, 1] : vector<8x32x128xf32> -> vector<8x128x32xf32>
    "tpu.trace_start"() <{level = 10 : i32, message = "bns,bsd->bnd"}> : () -> ()
    %cst_8 = arith.constant dense<0.000000e+00> : vector<8x128x128xf32>
    %18 = tpu.matmul %17, %0, %cst_8 {dimension_numbers = #tpu.dot_dimension_numbers<[2], [1], [1], [2], [0, 0, 0, 1, 1, 2], [0], [0]>} : vector<8x128x32xf32>, vector<8x32x128xf32>, vector<8x128x128xf32> -> vector<8x128x128xf32>
    "tpu.trace_stop"() : () -> ()
    %c0_i32 = arith.constant 0 : i32
    %19 = arith.cmpi eq, %arg1, %c0_i32 : i32
    %20 = arith.extui %19 : i1 to i32
    %c0_i32_9 = arith.constant 0 : i32
    %21 = arith.cmpi ne, %20, %c0_i32_9 : i32
    scf.if %21 {
      %c0_12 = arith.constant 0 : index
      %c0_13 = arith.constant 0 : index
      %c0_14 = arith.constant 0 : index
      %25 = vector.load %arg5[%c0_12, %c0_13, %c0_14] : memref<8x128x128xf32, #tpu.memory_space<vmem>>, vector<8x128x128xf32>
      tpu.vector_store %arg5[%c0_12, %c0_13, %c0_14], %18 {strides = array<i32>} : memref<8x128x128xf32, #tpu.memory_space<vmem>>, vector<8x128x128xf32>,
    } else {
    }
    %c0_i32_10 = arith.constant 0 : i32
    %22 = arith.cmpi sgt, %arg1, %c0_i32_10 : i32
    %23 = arith.extui %22 : i1 to i32
    %c0_i32_11 = arith.constant 0 : i32
    %24 = arith.cmpi ne, %23, %c0_i32_11 : i32
    scf.if %24 {
      %c0_12 = arith.constant 0 : index
      %c0_13 = arith.constant 0 : index
      %c0_14 = arith.constant 0 : index
      %25 = vector.load %arg5[%c0_12, %c0_13, %c0_14] : memref<8x128x128xf32, #tpu.memory_space<vmem>>, vector<8x128x128xf32>
      %26 = arith.addf %25, %18 : vector<8x128x128xf32>
      %c0_15 = arith.constant 0 : index
      %c0_16 = arith.constant 0 : index
      %c0_17 = arith.constant 0 : index
      %27 = vector.load %arg5[%c0_15, %c0_16, %c0_17] : memref<8x128x128xf32, #tpu.memory_space<vmem>>, vector<8x128x128xf32>
      tpu.vector_store %arg5[%c0_15, %c0_16, %c0_17], %26 {strides = array<i32>} : memref<8x128x128xf32, #tpu.memory_space<vmem>>, vector<8x128x128xf32>,
    } else {
    }
    return
  }
  func.func @transform_0(%arg0: i32, %arg1: i32) -> (i32, i32, i32) {
    %c0_i32 = arith.constant 0 : i32
    %c0_i32_0 = arith.constant 0 : i32
    %c0_i32_1 = arith.constant 0 : i32
    return %c0_i32, %arg1, %c0_i32_0 : i32, i32, i32
  }
  func.func @transform_1(%arg0: i32, %arg1: i32) -> (i32, i32) {
    %c0_i32 = arith.constant 0 : i32
    %c0_i32_0 = arith.constant 0 : i32
    return %c0_i32, %arg0 : i32, i32
  }
  func.func @transform_2(%arg0: i32, %arg1: i32) -> (i32, i32) {
    %c0_i32 = arith.constant 0 : i32
    %c0_i32_0 = arith.constant 0 : i32
    return %c0_i32, %arg0 : i32, i32
  }
  func.func @transform_3(%arg0: i32, %arg1: i32) -> (i32, i32, i32) {
    %c0_i32 = arith.constant 0 : i32
    %c0_i32_0 = arith.constant 0 : i32
    %c0_i32_1 = arith.constant 0 : i32
    return %c0_i32, %arg0, %c0_i32_0 : i32, i32, i32
  }
}

</mosaic_0001>

<bundles_post_ra>
// kernel: tpu_custom_call.1
= control target key start
LH: loop header
LB: loop body
LE: loop exit
PB: predicated region body
PF: predicated region fallthrough
CT: control target
= control target key end

     0   :  { %8 = vsyncpa [#allocation3], 0  ;;  %s3871_s0 = inlined_call_operand.hbm [shape: f32[8,32,128], index: 0, kind: input, shape index: {}]   ;;  %s3872_s1 = inlined_call_operand.hbm [shape: f32[128,256], index: 1, kind: input, shape index: {}]   ;;  %s3873_s2 = inlined_call_operand.hbm [shape: f32[1,256], index: 2, kind: input, shape index: {}]   ;;  %s3874_s3 = inlined_call_operand.hbm [shape: f32[8,256,128], index: 3, kind: output, shape index: {}]  }
   0x1   :  { %9 = vsyncpa [#allocation6], 0 }
   0x2   :  { %11 = vsyncpa [#allocation6 + $0x1], 0 }
   0x3   :  { %12 = vsyncpa [#allocation4], 0 }
   0x4   :  { %14 = vsyncpa [#allocation4 + $0x1], 0  ;;  %s3003_s12 = smov 0   ;;  %s3005_s13 = smov 0  }
   0x5   :  { %s3007_s14 = smov 0   ;;  %s3009_s15 = smov 0  }
   0x6   :  { %s3011_s16 = smov 0   ;;  %s3013_s17 = smov 0  }
   0x7 LB: > { %s32_s18 = sadd.s32 1, %s2966_s16  ;;  %s65_s19 = sadd.s32 1, %s2958_s14  ;;  %s2970_s17 = sphi %s3013_s17, %s20_s17   ;;  %s2966_s16 = sphi %s3011_s16, %s3892_s16   ;;  %s2962_s15 = sphi %s3009_s15, %s3891_s15   ;;  %s2958_s14 = sphi %s3007_s14, %s3890_s14   ;;  %s2954_s13 = sphi %s3005_s13, %s3889_s13   ;;  %s2950_s12 = sphi %s3003_s12, %s3888_s12  }
   0x8   : > { %p34_p0 = scmp.ge.s32.totalorder %s32_s18, 2  ;;  %p72_p1 = scmp.ne.s32.totalorder %s2958_s14, %s2954_s13 }
   0x9   : > { %p73_p2 = scmp.eq.s32.totalorder %s2970_s17, 0  ;;  %p2501_p4 = scmp.ge.s32.totalorder %s2970_s17, 2 }
   0xa   : > { %s3894_s18 = smov (%p34_p0, %s32_s18), 0  ;;  %p2686_p6 = scmp.lt.s32.totalorder %s2970_s17, 2 }
   0xb   : > { %p3043_p3 = por %p73_p2, %p72_p1  ;;  %s62_s21 = ssub.s32 %s2966_s16, %s3894_s18 }
   0xc   : > { %p63_p5 = scmp.eq.s32.totalorder %s62_s21, 0  ;;  %s171_s22 = sand.u32 1, %s2970_s17  }
   0xd   : > { %s173_s23 = sand.u32 1, %s2958_s14   ;;  %s2503_s26 = sshll.u32 %s2966_s16, 3 }
   0xe   : > { %s3054_s24 = scalar_select %p63_p5, %s2958_s14, %s65_s19  }
   0xf   : > { %s2502_s25 = sshll.u32 %s173_s23, 7  ;;  %s179_s29 = scalar_lea.hbm %s3872_s1, %s2503_s26 }
  0x10   : > { %s175_s30 = scalar_lea.vmem [#allocation5], %s2502_s25  ;;  %s180_s5 = sshll.u32 %s179_s29, 4  ;;  %s181_s5 = int_to_ptr.hbm [resolvable:$true] %s180_s5 }
  0x11   : > { %s182_s4 = sshll.u32 %s175_s30, 4  ;;  %p3064_p7 = pnand %p2686_p6, %p3043_p3  ;;  %s183_s4 = int_to_ptr.vmem [resolvable:$true] %s182_s4 }
  0x12   : > { %s3068_s7 = scalar_lea.sflag [#allocation6], %s171_s22  ;;  %s2972_s8 = smov 256  }
  0x13   : > { %s2973_s9 = smov 128   ;;  %s2974_s10 = smov 8  }
  0x14   : > { %2677 = dma.hbm_to_vmem [thread:$0]  (!%p3064_p7), %s181_s5, 2048, %s183_s4, %s3068_s7, %s2972_s8, %s2973_s9, %s2974_s10  }
  0x15   : > { %s3076_s11 = sadd.s32 4294967295, %s2970_s17   ;;  %s2498_s19 = sadd.s32 4294967294, %s2970_s17  }
  0x16   : > { %p78_p8 = scmp.ne.s32.totalorder %s2954_s13, %s2950_s12  ;;  %p79_p9 = scmp.eq.s32.totalorder %s3076_s11, 0 }
  0x17   : > { %p128_p10 = scmp.eq.s32.totalorder %s3076_s11, 1  ;;  %p134_p11 = scmp.eq.s32.totalorder %s2498_s19, 1 }
  0x18   : > { %p3085_p12 = por %p79_p9, %p78_p8  ;;  %p2499_p13 = scmp.ge.s32.totalorder %s2970_s17, 1 }
  0x19   : > { %p3093_p0 = por %p128_p10, %p72_p1  ;;  %p3097_p2 = por %p134_p11, %p78_p8 }
  0x1a   : > { %p141_p3 = scmp.lt.s32.totalorder %s2970_s17, 3  ;;  %s155_s27 = sshll.u32 %s3871_s0, 4  ;;  %s156_s27 = int_to_ptr.hbm [resolvable:$true] %s155_s27 }
  0x1b   : > { %s2975_s29 = smov [#allocation2]   ;;  %s198_s8 = scalar_lea.hbm %s3873_s2, %s2966_s16 }
  0x1c   : > { %p3105_p5 = pnand %p2499_p13, %p141_p3  ;;  %s157_s30 = sshll.u32 %s2975_s29, 4  ;;  %s158_s30 = int_to_ptr.vmem [resolvable:$true] %s157_s30 }
  0x1d   : > { %s195_s19 = scalar_lea.vmem [#allocation7], %s173_s23  ;;  %s200_s26 = sshll.u32 %s198_s8, 4  ;;  %s201_s26 = int_to_ptr.hbm [resolvable:$true] %s200_s26 }
  0x1e   : > { %p2670_p1 = pneg %p3105_p5  ;;  %s202_s25 = sshll.u32 %s195_s19, 4  ;;  %s203_s25 = int_to_ptr.vmem [resolvable:$true] %s202_s25 }
  0x1f   : > { %2680 = dma.hbm_to_vmem [thread:$0]  (!%p3064_p7), %s201_s26, 16, %s203_s25, %s3068_s7  }
  0x20   : > { %p2671_p6 = pnand %p2670_p1, %p79_p9  ;;  %211 = sbr.rel (%p3105_p5) target bundleno = 1171 (0x493), region = 32 }
  0x22   : > { %2673 = dma.hbm_to_vmem [thread:$0]  (!%p2671_p6), %s156_s27, 4096, %s158_s30, [#allocation3], %s2973_s9, %s2973_s9, %s2974_s10  }
  0x25   : > { %2937 = dma.done.wait (%p79_p9), [#allocation3], 4096  }
  0x26   : > { %2939 = vsyncadd (%p79_p9), [#allocation3], 4294963200  ;;  %s218_s23 = sand.u32 1, %s3076_s11   ;;  %s3133_s29 = sand.u32 1, %s2954_s13  }
  0x27   : > { %s2506_s4 = sshll.u32 %s3133_s29, 7  ;;  %s219_s9 = scalar_lea.sflag [#allocation6], %s218_s23 }
  0x28   : > { %s3136_s6 = scalar_lea.vmem [#allocation5], %s2506_s4 }
  0x29   : > { %2941 = dma.done.wait (%p3085_p12), %s219_s9, 2064  }
  0x2a   : > { %2943 = vsyncadd (%p3085_p12), %s219_s9, 4294965232  ;;  %v308_v0 = vld [vmem:[%s3136_s6 + $0x78] sm:$0xff]  ;;  %v307_v1 = vld [vmem:[%s3136_s6 + $0x70] sm:$0xff]  ;;  %s231_s7 = scalar_lea.vmem [#allocation7], %s3133_s29  ;;  %s2507_s10 = sshll.u32 %s3133_s29, 10 }
  0x2b   : > { %313 = vmatpush.msra.mxu0 %v308_v0  ;;  %v306_v2 = vld [vmem:[%s3136_s6 + $0x68] sm:$0xff]  ;;  %v305_v3 = vld [vmem:[%s3136_s6 + $0x60] sm:$0xff]  ;;  %v304_v4 = vld [vmem:[%s3136_s6 + $0x58] sm:$0xff]  ;;  %s3597_s11 = scalar_lea.vmem [#allocation8], %s2507_s10  ;;  %s2348_s20 = scalar_lea.sflag [#allocation4], %s3133_s29 }
  0x2c   : > { %v303_v5 = vld [vmem:[%s3136_s6 + $0x50] sm:$0xff]  ;;  %v302_v6 = vld [vmem:[%s3136_s6 + $0x48] sm:$0xff]  ;;  %v301_v7 = vld [vmem:[%s3136_s6 + $0x40] sm:$0xff] }
  0x2d   : > { %314 = vmatpush.msra.mxu0 %v307_v1  ;;  %v300_v8 = vld [vmem:[%s3136_s6 + $0x38] sm:$0xff]  ;;  %v299_v9 = vld [vmem:[%s3136_s6 + $0x30] sm:$0xff]  ;;  %v298_v11 = vld [vmem:[%s3136_s6 + $0x28] sm:$0xff] }
  0x2e   : > { %v264_v10 = vld [vmem:[#allocation2 + $0x18] sm:$0xff]  ;;  %v263_v12 = vld [vmem:[#allocation2 + $0x10] sm:$0xff]  ;;  %v297_v13 = vld [vmem:[%s3136_s6 + $0x20] sm:$0xff] }
  0x2f   : > { %315 = vmatpush.msra.mxu0 %v306_v2  ;;  %983 = vmatpush.msra.mxu1 %v264_v10  ;;  %v262_v14 = vld [vmem:[#allocation2 + $0x8] sm:$0xff]  ;;  %v296_v15 = vld [vmem:[%s3136_s6 + $0x18] sm:$0xff]  ;;  %v261_v16 = vld [vmem:[#allocation2] sm:$0xff] }
  0x30   : > { %2642 = vmatpush.msra.mxu3 %v264_v10  ;;  %v295_v17 = vld [vmem:[%s3136_s6 + $0x10] sm:$0xff]  ;;  %v294_v18 = vld [vmem:[%s3136_s6 + $0x8] sm:$0xff]  ;;  %v293_v19 = vld [vmem:[%s3136_s6] sm:$0xff] }
  0x31   : > { %316 = vmatpush.msra.mxu0 %v305_v3  ;;  %984 = vmatpush.msra.mxu1 %v263_v12  ;;  %v268_v20 = vld [vmem:[#allocation2 + $0x38] sm:$0xff]  ;;  %v267_v21 = vld [vmem:[#allocation2 + $0x30] sm:$0xff]  ;;  %v266_v22 = vld [vmem:[#allocation2 + $0x28] sm:$0xff] }
  0x32   : > { %2643 = vmatpush.msra.mxu3 %v263_v12  ;;  %2646 = vmatpush.msra.mxu2 %v268_v20  ;;  %v265_v23 = vld [vmem:[#allocation2 + $0x20] sm:$0xff]  ;;  %v3162_v25 = vld [vmem:[#allocation2 + $0x48] sm:$0xff]  ;;  %v3165_v26 = vld [vmem:[#allocation2 + $0x50] sm:$0xff] }
  0x33   : > { %317 = vmatpush.msra.mxu0 %v304_v4  ;;  %985 = vmatpush.msra.mxu1 %v262_v14  ;;  %v3159_v24 = vld [vmem:[#allocation2 + $0x40] sm:$0xff]  ;;  %v276_v27 = vld [vmem:[#allocation2 + $0x78] sm:$0xff]  ;;  %v275_v28 = vld [vmem:[#allocation2 + $0x70] sm:$0xff] }
  0x34   : > { %2644 = vmatpush.msra.mxu3 %v262_v14  ;;  %2648 = vmatpush.msra.mxu2 %v267_v21  ;;  %v274_v29 = vld [vmem:[#allocation2 + $0x68] sm:$0xff]  ;;  %v3168_v30 = vld [vmem:[#allocation2 + $0x58] sm:$0xff]  ;;  %v273_v31 = vld [vmem:[#allocation2 + $0x60] sm:$0xff] }
  0x35   : > { %318 = vmatpush.msra.mxu0 %v303_v5  ;;  %986 = vmatpush.msra.mxu1 %v261_v16  ;;  %v280_v32 = vld [vmem:[#allocation2 + $0x98] sm:$0xff]  ;;  %v279_v33 = vld [vmem:[#allocation2 + $0x90] sm:$0xff]  ;;  %v278_v34 = vld [vmem:[#allocation2 + $0x88] sm:$0xff] }
  0x36   : > { %2645 = vmatpush.msra.mxu3 %v261_v16  ;;  %2650 = vmatpush.msra.mxu2 %v266_v22  ;;  %v277_v35 = vld [vmem:[#allocation2 + $0x80] sm:$0xff]  ;;  %v3182_v43 = vld [vmem:[#allocation2 + $0xa8] sm:$0xff]  ;;  %v3185_v45 = vld [vmem:[#allocation2 + $0xb0] sm:$0xff] }
  0x37   : > { %319 = vmatpush.msra.mxu0 %v302_v6  ;;  %1322 = vmatpush.msrb.mxu1 %v276_v27  ;;  %v3177_v41 = vld [vmem:[#allocation2 + $0xa0] sm:$0xff]  ;;  %3884 = vst [vmem:[#allocation15_spill] sm:$0xff] %v3182_v43  ;;  %v3188_v47 = vld [vmem:[#allocation2 + $0xb8] sm:$0xff]  ;;  %v3196_v51 = vld [vmem:[#allocation2 + $0xc8] sm:$0xff] }
  0x38   : > { %2647 = vmatpush.msrb.mxu3 %v268_v20  ;;  %2652 = vmatpush.msra.mxu2 %v265_v23  ;;  %3883 = vst [vmem:[#allocation14_spill] sm:$0xff] %v3177_v41  ;;  %v3191_v49 = vld [vmem:[#allocation2 + $0xc0] sm:$0xff]  ;;  %v3199_v53 = vld [vmem:[#allocation2 + $0xd0] sm:$0xff]  ;;  %v3202_v55 = vld [vmem:[#allocation2 + $0xd8] sm:$0xff] }
  0x39   : > { %320 = vmatpush.msra.mxu0 %v301_v7  ;;  %1323 = vmatpush.msrb.mxu1 %v275_v28  ;;  %v3205_v57 = vld [vmem:[#allocation2 + $0xe0] sm:$0xff]  ;;  %v3208_v59 = vld [vmem:[#allocation2 + $0xe8] sm:$0xff]  ;;  %v3211_v61 = vld [vmem:[#allocation2 + $0xf0] sm:$0xff] }
  0x3a   : > { %2649 = vmatpush.msrb.mxu3 %v267_v21  ;;  %1435 = vmatpush.msrb.mxu2 %v280_v32  ;;  %v3214_v63 = vld [vmem:[#allocation2 + $0xf8] sm:$0xff]  ;;  %v3219_v1 = vld [vmem:[%s231_s7] ss:$0 sm:$0xff] }
  0x3b   : > { %321 = vmatpush.msra.mxu0 %v300_v8  ;;  %1324 = vmatpush.msrb.mxu1 %v274_v29 }
  0x3c   : > { %2651 = vmatpush.msrb.mxu3 %v266_v22  ;;  %1436 = vmatpush.msrb.mxu2 %v279_v33 }
  0x3d   : > { %322 = vmatpush.msra.mxu0 %v299_v9  ;;  %1325 = vmatpush.msrb.mxu1 %v273_v31 }
  0x3e   : > { %2653 = vmatpush.msrb.mxu3 %v265_v23  ;;  %1437 = vmatpush.msrb.mxu2 %v278_v34 }
  0x3f   : > { %323 = vmatpush.msra.mxu0 %v298_v11 }
  0x40   : > { %1438 = vmatpush.msrb.mxu2 %v277_v35 }
  0x41   : > { %324 = vmatpush.msra.mxu0 %v297_v13 }
  0x43   : > { %325 = vmatpush.msra.mxu0 %v296_v15 }
  0x45   : > { %326 = vmatpush.msra.mxu0 %v295_v17 }
  0x47   : > { %327 = vmatpush.msra.mxu0 %v294_v18 }
  0x49   : > { %328 = vmatpush.msra.mxu0 %v293_v19 }
  0x4a   : > { %329 = vmatmul.f32.vlgmr.msra.gmra.mxu0 %v261_v16 }
  0x4b   : > { %1096 = vmatpush.msrb.mxu0 %v268_v20 }
  0x4d   : > { %1097 = vmatpush.msrb.mxu0 %v267_v21 }
  0x4f   : > { %1098 = vmatpush.msrb.mxu0 %v266_v22 }
  0x51   : > { %1099 = vmatpush.msrb.mxu0 %v265_v23 }
  0x52   : > { %332 = vmatmul.f32.gmra.mxu0 %v262_v14 }
  0x5a   : > { %335 = vmatmul.f32.gmra.mxu0 %v263_v12 }
  0x62   : > { %338 = vmatmul.f32.gmra.mxu0 %v264_v10 }
  0x6a   : > { %341 = vmatmul.f32.gmra.mxu0 %v265_v23 }
  0x72   : > { %344 = vmatmul.f32.gmra.mxu0 %v266_v22 }
  0x7a   : > { %347 = vmatmul.f32.gmra.mxu0 %v267_v21 }
  0x82   : > { %350 = vmatmul.f32.gmra.mxu0 %v268_v20 }
  0x8a   : > { %353 = vmatmul.f32.gmra.mxu0 %v3159_v24 }
  0x92   : > { %356 = vmatmul.f32.gmra.mxu0 %v3162_v25 }
  0x9a   : > { %359 = vmatmul.f32.gmra.mxu0 %v3165_v26 }
  0xa2   : > { %362 = vmatmul.f32.gmra.mxu0 %v3168_v30 }
  0xaa   : > { %365 = vmatmul.f32.gmra.mxu0 %v273_v31 }
  0xb2   : > { %368 = vmatmul.f32.gmra.mxu0 %v274_v29 }
  0xba   : > { %371 = vmatmul.f32.gmra.mxu0 %v275_v28 }
  0xc2   : > { %374 = vmatmul.f32.gmra.mxu0 %v276_v27 }
  0xc7   : > { %v3171_v36 = vpop.f32.mrf.mxu0 }
  0xca   : > { %377 = vmatmul.f32.gmra.mxu0 %v277_v35 }
  0xcf   : > { %v3173_v37 = vpop.f32.mrf.mxu0 }
  0xd2   : > { %380 = vmatmul.f32.gmra.mxu0 %v278_v34 }
  0xd7   : > { %v336_v38 = vpop.f32.mrf.mxu0 }
  0xd8   : > { %v3225_v4 = vadd.f32 %v3219_v1, %v336_v38 }
  0xda   : > { %383 = vmatmul.f32.gmra.mxu0 %v279_v33 }
  0xdf   : > { %v339_v39 = vpop.f32.mrf.mxu0 }
  0xe0   : > { %v3244_v13 = vadd.f32 %v3219_v1, %v339_v39  ;;  %v331_v39 = vadd.f32 %v3219_v1, %v3171_v36 }
  0xe2   : > { %386 = vmatmul.f32.gmra.mxu0 %v280_v32 }
  0xe7   : > { %v3175_v40 = vpop.f32.mrf.mxu0 }
  0xe8   : > { %v343_v38 = vadd.f32 %v3219_v1, %v3175_v40  ;;  %v334_v40 = vadd.f32 %v3219_v1, %v3173_v37 }
  0xea   : > { %389 = vmatmul.f32.gmra.mxu0 %v3177_v41 }
  0xef   : > { %v3180_v42 = vpop.f32.mrf.mxu0 }
  0xf2   : > { %392 = vmatmul.f32.gmra.mxu0 %v3182_v43 }
  0xf7   : > { %v348_v44 = vpop.f32.mrf.mxu0 }
  0xf8   : > { %v3222_v3 = vadd.f32 %v3219_v1, %v348_v44 }
  0xfa   : > { %395 = vmatmul.f32.gmra.mxu0 %v3185_v45  ;;  %v440_v6 = vmax.f32 %v3225_v4, %v3222_v3 }
  0xff   : > { %v351_v46 = vpop.f32.mrf.mxu0 }
 0x100   : > { %v3237_v10 = vadd.f32 %v3219_v1, %v351_v46  ;;  %v426_v46 = vmax.f32 %v331_v39, %v343_v38 }
 0x102   : > { %398 = vmatmul.f32.gmra.mxu0 %v3188_v47  ;;  %v447_v16 = vmax.f32 %v3244_v13, %v3237_v10 }
 0x107   : > { %v354_v48 = vpop.f32.mrf.mxu0 }
 0x108   : > { %v355_v44 = vadd.f32 %v3219_v1, %v354_v48 }
 0x10a   : > { %401 = vmatmul.f32.gmra.mxu0 %v3191_v49 }
 0x10f   : > { %v3194_v50 = vpop.f32.mrf.mxu0 }
 0x110   : > { %v3286_v36 = vadd.f32 %v3219_v1, %v3194_v50 }
 0x112   : > { %404 = vmatmul.f32.gmra.mxu0 %v3196_v51 }
 0x117   : > { %v360_v52 = vpop.f32.mrf.mxu0 }
 0x118   : > { %v3228_v5 = vadd.f32 %v3219_v1, %v360_v52 }
 0x11a   : > { %407 = vmatmul.f32.gmra.mxu0 %v3199_v53  ;;  %v441_v8 = vmax.f32 %v440_v6, %v3228_v5  ;;  %v346_v6 = vadd.f32 %v3219_v1, %v3180_v42 }
 0x11f   : > { %v363_v54 = vpop.f32.mrf.mxu0 }
 0x120   : > { %v3247_v14 = vadd.f32 %v3219_v1, %v363_v54 }
 0x122   : > { %410 = vmatmul.f32.gmra.mxu0 %v3202_v55  ;;  %v448_v18 = vmax.f32 %v447_v16, %v3247_v14 }
 0x127   : > { %v366_v56 = vpop.f32.mrf.mxu0 }
 0x128   : > { %v367_v52 = vadd.f32 %v3219_v1, %v366_v56 }
 0x12a   : > { %413 = vmatmul.f32.gmra.mxu0 %v3205_v57 }
 0x12f   : > { %v369_v58 = vpop.f32.mrf.mxu0 }
 0x130   : > { %v3290_v16 = vadd.f32 %v3219_v1, %v369_v58 }
 0x132   : > { %416 = vmatmul.f32.gmra.mxu0 %v3208_v59 }
 0x137   : > { %v372_v60 = vpop.f32.mrf.mxu0 }
 0x138   : > { %v3233_v7 = vadd.f32 %v3219_v1, %v372_v60  ;;  %v427_v60 = vmax.f32 %v426_v46, %v355_v44 }
 0x13a   : > { %419 = vmatmul.f32.gmra.mxu0 %v3211_v61  ;;  %v442_v11 = vmax.f32 %v441_v8, %v3233_v7  ;;  %v428_v8 = vmax.f32 %v427_v60, %v367_v52 }
 0x13f   : > { %v375_v62 = vpop.f32.mrf.mxu0 }
 0x140   : > { %v3255_v17 = vadd.f32 %v3219_v1, %v375_v62 }
 0x142   : > { %422 = vmatmul.f32.gmra.mxu0 %v3214_v63  ;;  %v449_v20 = vmax.f32 %v448_v18, %v3255_v17 }
 0x147   : > { %v378_v0 = vpop.f32.mrf.mxu0 }
 0x148   : > { %v379_v62 = vadd.f32 %v3219_v1, %v378_v0 }
 0x14a   : > { %v429_v48 = vmax.f32 %v428_v8, %v379_v62 }
 0x14f   : > { %v381_v2 = vpop.f32.mrf.mxu0 }
 0x150   : > { %v3294_v18 = vadd.f32 %v3219_v1, %v381_v2 }
 0x157   : > { %v384_v9 = vpop.f32.mrf.mxu0 }
 0x158   : > { %v3241_v12 = vadd.f32 %v3219_v1, %v384_v9 }
 0x15a   : > { %v3250_v15 = vmax.f32 %v442_v11, %v3241_v12  ;;  %v433_v11 = vmax.f32 %v334_v40, %v346_v6 }
 0x15c   : > { %v434_v42 = vmax.f32 %v433_v11, %v3286_v36 }
 0x15e   : > { %v435_v50 = vmax.f32 %v434_v42, %v3290_v16 }
 0x15f   : > { %v387_v19 = vpop.f32.mrf.mxu0 }
 0x160   : > { %v3260_v21 = vadd.f32 %v3219_v1, %v387_v19 }
 0x162   : > { %v3263_v22 = vmax.f32 %v449_v20, %v3260_v21 }
 0x167   : > { %v390_v23 = vpop.f32.mrf.mxu0 }
 0x168   : > { %v391_v9 = vadd.f32 %v3219_v1, %v390_v23 }
 0x16a   : > { %v430_v0 = vmax.f32 %v429_v48, %v391_v9 }
 0x16f   : > { %v393_v27 = vpop.f32.mrf.mxu0 }
 0x170   : > { %v3299_v23 = vadd.f32 %v3219_v1, %v393_v27 }
 0x177   : > { %v396_v28 = vpop.f32.mrf.mxu0 }
 0x17f   : > { %v399_v29 = vpop.f32.mrf.mxu0 }
 0x180   : > { %v3266_v31 = vadd.f32 %v3219_v1, %v399_v29 }
 0x187   : > { %v402_v33 = vpop.f32.mrf.mxu0 }
 0x188   : > { %v403_v56 = vadd.f32 %v3219_v1, %v402_v33  ;;  %v436_v33 = vmax.f32 %v435_v50, %v3294_v18 }
 0x18a   : > { %v431_v20 = vmax.f32 %v430_v0, %v403_v56  ;;  %v437_v11 = vmax.f32 %v436_v33, %v3299_v23 }
 0x18f   : > { %v405_v34 = vpop.f32.mrf.mxu0 }
 0x190   : > { %v3303_v58 = vadd.f32 %v3219_v1, %v405_v34 }
 0x197   : > { %v408_v35 = vpop.f32.mrf.mxu0 }
 0x19f   : > { %v3276_v54 = vpop.f32.mrf.mxu0 }
 0x1a7   : > { %v414_v19 = vpop.f32.mrf.mxu0 }
 0x1a8   : > { %v415_v37 = vadd.f32 %v3219_v1, %v414_v19 }
 0x1aa   : > { %v432_v29 = vmax.f32 %v431_v20, %v415_v37  ;;  %v438_v20 = vmax.f32 %v437_v11, %v3303_v58 }
 0x1ac   : > { %v482_v46 = vsub.f32 %v415_v37, %v432_v29  ;;  %v454_v60 = vsub.f32 %v331_v39, %v432_v29  ;;  %v458_v8 = vsub.f32 %v343_v38, %v432_v29  ;;  %v462_v2 = vsub.f32 %v355_v44, %v432_v29 }
 0x1ad   : > { %v466_v48 = vsub.f32 %v367_v52, %v432_v29  ;;  %v470_v0 = vsub.f32 %v379_v62, %v432_v29  ;;  %v474_v27 = vsub.f32 %v391_v9, %v432_v29  ;;  %v478_v43 = vsub.f32 %v403_v56, %v432_v29 }
 0x1ae   : > { %v486_v19 = vmul.f32 1.442695, %v454_v60  ;;  %v494_v32 = vmul.f32 1.442695, %v458_v8  ;;  %v542_v42 = vmul.f32 1.442695, %v482_v46  ;;  %v3309_v38 = vadd.f32 %v3219_v1, %v396_v28 }
 0x1af   : > { %v417_v41 = vpop.f32.mrf.mxu0  ;;  %v502_v34 = vmul.f32 1.442695, %v462_v2  ;;  %v510_v37 = vmul.f32 1.442695, %v466_v48  ;;  %v518_v44 = vmul.f32 1.442695, %v470_v0  ;;  %v3312_v52 = vadd.f32 %v3219_v1, %v408_v35 }
 0x1b0   : > { %v418_v50 = vadd.f32 %v3219_v1, %v417_v41  ;;  %2750 = vpow2.f32 %v486_v19  ;;  %v526_v62 = vmul.f32 1.442695, %v474_v27  ;;  %v534_v9 = vmul.f32 1.442695, %v478_v43 }
 0x1b1   : > { %2752 = vpow2.f32 %v494_v32  ;;  %v444_v28 = vmax.f32 %v3250_v15, %v3309_v38 }
 0x1b2   : > { %v439_v39 = vmax.f32 %v438_v20, %v418_v50  ;;  %2754 = vpow2.f32 %v542_v42 }
 0x1b3   : > { %2756 = vpow2.f32 %v502_v34 }
 0x1b4   : > { %v483_v56 = vsub.f32 %v418_v50, %v439_v39  ;;  %v455_v29 = vsub.f32 %v334_v40, %v439_v39  ;;  %v459_v33 = vsub.f32 %v346_v6, %v439_v39  ;;  %2758 = vpow2.f32 %v510_v37 }
 0x1b5   : > { %v463_v41 = vsub.f32 %v3286_v36, %v439_v39  ;;  %v467_v46 = vsub.f32 %v3290_v16, %v439_v39  ;;  %2760 = vpow2.f32 %v518_v44  ;;  %v471_v35 = vsub.f32 %v3294_v18, %v439_v39 }
 0x1b6   : > { %v544_v32 = vmul.f32 1.442695, %v483_v56  ;;  %v3319_v60 = vpop.eup %2750  ;;  %2762 = vpow2.f32 %v526_v62  ;;  %v475_v43 = vsub.f32 %v3299_v23, %v439_v39  ;;  %v488_v40 = vmul.f32 1.442695, %v455_v29 }
 0x1b7   : > { %v420_v8 = vpop.f32.mrf.mxu0  ;;  %v496_v6 = vmul.f32 1.442695, %v459_v33  ;;  %v3322_v2 = vpop.eup %2752  ;;  %v445_v36 = vmax.f32 %v444_v28, %v3312_v52  ;;  %2764 = vpow2.f32 %v534_v9  ;;  %v504_v15 = vmul.f32 1.442695, %v463_v41 }
 0x1b8   : > { %v3326_v16 = vadd.f32 %v3219_v1, %v420_v8  ;;  %v3328_v48 = vpop.eup %2754  ;;  %v550_v18 = vadd.f32 %v3322_v2, %v3319_v60  ;;  %2766 = vpow2.f32 %v488_v40  ;;  %v512_v11 = vmul.f32 1.442695, %v467_v46 }
 0x1b9   : > { %v3332_v0 = vpop.eup %2756  ;;  %v3336_v23 = vadd.f32 %v3219_v1, %v3276_v54  ;;  %2768 = vpow2.f32 %v496_v6  ;;  %v520_v42 = vmul.f32 1.442695, %v471_v35  ;;  %v479_v50 = vsub.f32 %v3303_v58, %v439_v39 }
 0x1ba   : > { %v3339_v19 = vmax.f32 %v445_v36, %v3326_v16  ;;  %v3341_v27 = vpop.eup %2758  ;;  %2770 = vpow2.f32 %v544_v32  ;;  %v551_v20 = vadd.f32 %v3332_v0, %v550_v18  ;;  %v528_v34 = vmul.f32 1.442695, %v475_v43 }
 0x1bb   : > { %v3345_v37 = vpop.eup %2760  ;;  %2772 = vpow2.f32 %v504_v15 }
 0x1bc   : > { %v456_v54 = vsub.f32 %v3225_v4, %v3339_v19  ;;  %v460_v44 = vsub.f32 %v3222_v3, %v3339_v19  ;;  %v3351_v62 = vpop.eup %2762  ;;  %v552_v9 = vadd.f32 %v3341_v27, %v551_v20  ;;  %2774 = vpow2.f32 %v512_v11 }
 0x1bd   : > { %v464_v56 = vsub.f32 %v3228_v5, %v3339_v19  ;;  %v468_v58 = vsub.f32 %v3233_v7, %v3339_v19  ;;  %v3358_v39 = vpop.eup %2764  ;;  %v3885_v4 = vmax.f32 %v3263_v22, %v3266_v31  ;;  %2776 = vpow2.f32 %v520_v42 }
 0x1be   : > { %v472_v3 = vsub.f32 %v3241_v12, %v3339_v19  ;;  %v3366_v33 = vpop.eup %2766  ;;  %v553_v46 = vadd.f32 %v3345_v37, %v552_v9  ;;  %2778 = vpow2.f32 %v528_v34  ;;  %v536_v5 = vmul.f32 1.442695, %v479_v50 }
 0x1bf   : > { %v452_v29 = vmax.f32 %v3885_v4, %v3336_v23  ;;  %v423_v41 = vpop.f32.mrf.mxu0  ;;  %v490_v28 = vmul.f32 1.442695, %v456_v54  ;;  %v3369_v7 = vpop.eup %2768  ;;  %v476_v22 = vsub.f32 %v3309_v38, %v3339_v19  ;;  %v498_v35 = vmul.f32 1.442695, %v460_v44 }
 0x1c0   : > { %v3372_v32 = vadd.f32 %v3219_v1, %v423_v41  ;;  %v506_v8 = vmul.f32 1.442695, %v464_v56  ;;  %v3376_v43 = vpop.eup %2770  ;;  %v554_v12 = vadd.f32 %v3351_v62, %v553_v46  ;;  %v557_v40 = vadd.f32 %v3369_v7, %v3366_v33 }
 0x1c1   : > { %2780 = vpow2.f32 %v490_v28  ;;  %v514_v6 = vmul.f32 1.442695, %v468_v58  ;;  %v3381_v36 = vpop.eup %2772  ;;  %v480_v11 = vsub.f32 %v3312_v52, %v3339_v19  ;;  %v484_v20 = vsub.f32 %v3326_v16, %v3339_v19 }
 0x1c2   : > { %v3384_v15 = vmax.f32 %v452_v29, %v3372_v32  ;;  %2782 = vpow2.f32 %v498_v35  ;;  %v3386_v1 = vpop.eup %2774  ;;  %v555_v38 = vadd.f32 %v3358_v39, %v554_v12  ;;  %v558_v18 = vadd.f32 %v3381_v36, %v557_v40 }
 0x1c3   : > { %2784 = vpow2.f32 %v536_v5  ;;  %v3392_v42 = vpop.eup %2776  ;;  %v522_v50 = vmul.f32 1.442695, %v472_v3  ;;  %v530_v9 = vmul.f32 1.442695, %v476_v22  ;;  %v538_v4 = vmul.f32 1.442695, %v480_v11 }
 0x1c4   : > { %2786 = vpow2.f32 %v506_v8  ;;  %v3396_v34 = vpop.eup %2778  ;;  %v3399_v54 = vadd.f32 %v3328_v48, %v555_v38  ;;  %v559_v44 = vadd.f32 %v3386_v1, %v558_v18  ;;  %v457_v56 = vsub.f32 %v3244_v13, %v3384_v15 }
 0x1c5   : > { %2788 = vpow2.f32 %v514_v6  ;;  %v461_v52 = vsub.f32 %v3237_v10, %v3384_v15  ;;  %v469_v16 = vsub.f32 %v3255_v17, %v3384_v15  ;;  %v473_v19 = vsub.f32 %v3260_v21, %v3384_v15 }
 0x1c6   : > { %2790 = vrcp.f32 %v3399_v54  ;;  %v465_v29 = vsub.f32 %v3247_v14, %v3384_v15  ;;  %v560_v13 = vadd.f32 %v3392_v42, %v559_v44  ;;  %v477_v10 = vsub.f32 %v3266_v31, %v3384_v15 }
 0x1c7   : > { %v3410_v58 = vpop.eup %2780  ;;  %2792 = vpow2.f32 %v522_v50  ;;  %v546_v41 = vmul.f32 1.442695, %v484_v20  ;;  %v492_v14 = vmul.f32 1.442695, %v457_v56  ;;  %v500_v28 = vmul.f32 1.442695, %v461_v52 }
 0x1c8   : > { %v3415_v3 = vpop.eup %2782  ;;  %v561_v5 = vadd.f32 %v3396_v34, %v560_v13  ;;  %2794 = vpow2.f32 %v530_v9  ;;  %v508_v8 = vmul.f32 1.442695, %v465_v29  ;;  %v516_v11 = vmul.f32 1.442695, %v469_v16 }
 0x1c9   : > { %v3420_v17 = vpop.eup %2784  ;;  %v564_v21 = vadd.f32 %v3415_v3, %v3410_v58  ;;  %2796 = vpow2.f32 %v538_v4  ;;  %v481_v9 = vsub.f32 %v3336_v23, %v3384_v15  ;;  %v524_v56 = vmul.f32 1.442695, %v473_v19 }
 0x1ca   : > { %v3424_v46 = vpop.eup %2786  ;;  %v562_v31 = vadd.f32 %v3420_v17, %v561_v5  ;;  %2798 = vpow2.f32 %v492_v14  ;;  %v485_v4 = vsub.f32 %v3372_v32, %v3384_v15  ;;  %v587_v29 = vand.u32 2147483647, %v3399_v54 }
 0x1cb   : > { %v3427_v22 = vpop.eup %2788  ;;  %v565_v35 = vadd.f32 %v3424_v46, %v564_v21  ;;  %2800 = vpow2.f32 %v500_v28  ;;  %v589_v16 = vand.u32 2147483648, %v3399_v54  ;;  %v532_v5 = vmul.f32 1.442695, %v477_v10 }
 0x1cc   : > { %v2791_v12 = vpop.eup %2790  ;;  %2802 = vpow2.f32 %v546_v41  ;;  %v3436_v18 = vadd.f32 %v3376_v43, %v562_v31  ;;  %vm583_vm1 = vweird.f32 %v3399_v54  ;;  %v540_v15 = vmul.f32 1.442695, %v481_v9 }
 0x1cd   : > { %v566_v40 = vadd.f32 %v3427_v22, %v565_v35  ;;  %v3432_v6 = vpop.eup %2792  ;;  %v579_v38 = vmul.f32 %v2791_v12, %v3399_v54  ;;  %2804 = vpow2.f32 %v508_v8  ;;  %vm584_vm0 = vweird.f32 %v2791_v12 }
 0x1ce   : > { %v3439_v50 = vpop.eup %2794  ;;  %2806 = vrcp.f32 %v3436_v18  ;;  %v548_v8 = vmul.f32 1.442695, %v485_v4  ;;  %vm585_vm2 = vmor %vm583_vm1, %vm584_vm0  ;;  %v590_v31 = vor.u32 1.1754944e-38, %v589_v16  ;;  %vm588_vm3 = vcmp.eq.f32.partialorder %v587_v29, 8.507059e+37 }
 0x1cf   : > { %v567_v20 = vadd.f32 %v3432_v6, %v566_v40  ;;  %v580_v44 = vsub.f32 1.0, %v579_v38  ;;  %v3444_v52 = vpop.eup %2796  ;;  %2808 = vpow2.f32 %v516_v11  ;;  %vm598_vm5 = vweird.f32 %v3436_v18 }
 0x1d0   : > { %v3451_v41 = vpop.eup %2798  ;;  %2810 = vpow2.f32 %v524_v56  ;;  %vm922_vm0 = vcmask 261120  }
 0x1d1   : > { %v568_v13 = vadd.f32 %v3439_v50, %v567_v20  ;;  %v581_v21 = vmul.f32 %v2791_v12, %v580_v44  ;;  %v3453_v14 = vpop.eup %2800  ;;  %2812 = vpow2.f32 %v532_v5  ;;  %v602_v5 = vand.u32 2147483647, %v3436_v18 }
 0x1d2   : > { %v3457_v19 = vpop.eup %2802  ;;  %v571_v28 = vadd.f32 %v3453_v14, %v3451_v41 }
 0x1d3   : > { %v569_v23 = vadd.f32 %v3444_v52, %v568_v13  ;;  %v582_v32 = vadd.f32 %v2791_v12, %v581_v21  ;;  %v3461_v35 = vpop.eup %2804  ;;  %v604_v13 = vand.u32 2147483648, %v3436_v18  ;;  %vm603_vm7 = vcmp.eq.f32.partialorder %v602_v5, 8.507059e+37 }
 0x1d4   : > { %v2807_v40 = vpop.eup %2806  ;;  %v572_v38 = vadd.f32 %v3461_v35, %v571_v28 }
 0x1d5   : > { %v3464_v10 = vadd.f32 %v3457_v19, %v569_v23  ;;  %v586_v54 = vsel %vm585_vm2, %v2791_v12, %v582_v32  ;;  %v594_v20 = vmul.f32 %v2807_v40, %v3436_v18  ;;  %v3469_v44 = vpop.eup %2808  ;;  %vm599_vm4 = vweird.f32 %v2807_v40 }
 0x1d6   : > { %v591_v11 = vsel %vm588_vm3, %v590_v31, %v586_v54  ;;  %v573_v29 = vadd.f32 %v3469_v44, %v572_v38  ;;  %v3475_v16 = vpop.eup %2810  ;;  %vm600_vm6 = vmor %vm598_vm5, %vm599_vm4  ;;  %v605_v31 = vor.u32 1.1754944e-38, %v604_v13 }
 0x1d7   : > { %2814 = vrcp.f32 %v3464_v10  ;;  %v642_v9 = vmul.f32 %v3332_v0, %v591_v11  ;;  %v638_v56 = vmul.f32 %v3322_v2, %v591_v11  ;;  %v592_v4 = vmul.f32 %v3319_v60, %v591_v11  ;;  %v3489_v32 = vpop.eup %2812 }
 0x1d8   : > { %2816 = vpow2.f32 %v540_v15  ;;  %v595_v12 = vsub.f32 1.0, %v594_v20  ;;  %v3479_v21 = vmul.f32 %v3351_v62, %v591_v11  ;;  %v3482_v0 = vmul.f32 %v3341_v27, %v591_v11 }
 0x1d9   : > { %2818 = vpow2.f32 %v548_v8  ;;  %730 = vxpose.xlu2.b32.start [1/4] (short) %v642_v9, 128  ;;  %698 = vxpose.xlu1.b32.start [1/4] (short) %v638_v56, 128  ;;  %v3485_v2 = vmul.f32 %v3345_v37, %v591_v11  ;;  %v574_v23 = vadd.f32 %v3475_v16, %v573_v29  ;;  %v3492_v15 = vmul.f32 %v3358_v39, %v591_v11 }
 0x1da   : > { %666 = vxpose.xlu0.b32.start [1/4] (short) %v592_v4, 128  ;;  %v596_v60 = vmul.f32 %v2807_v40, %v595_v12  ;;  %v3495_v62 = vmul.f32 %v3328_v48, %v591_v11  ;;  %v617_v39 = vand.u32 2147483647, %v3464_v10  ;;  %v619_v18 = vand.u32 2147483648, %v3464_v10 }
 0x1db   : > { %v575_v37 = vadd.f32 %v3489_v32, %v574_v23  ;;  %vm613_vm9 = vweird.f32 %v3464_v10 }
 0x1dc   : > { %v597_v28 = vadd.f32 %v2807_v40, %v596_v60  ;;  %vm618_vm11 = vcmp.eq.f32.partialorder %v617_v39, 8.507059e+37 }
 0x1dd   : > { %v2815_v27 = vpop.eup %2814 }
 0x1de   : > { %v3499_v8 = vpop.eup %2816  ;;  %v609_v54 = vmul.f32 %v2815_v27, %v3464_v10  ;;  %v601_v20 = vsel %vm600_vm6, %v2807_v40, %v597_v28  ;;  %vm614_vm8 = vweird.f32 %v2815_v27 }
 0x1df   : > { %v2819_v38 = vpop.eup %2818  ;;  %v576_v48 = vadd.f32 %v3499_v8, %v575_v37  ;;  %v606_v11 = vsel %vm603_vm7, %v605_v31, %v601_v20  ;;  %vm615_vm10 = vmor %vm613_vm9, %vm614_vm8 }
 0x1e0   : > { %v610_v9 = vsub.f32 1.0, %v609_v54  ;;  %v643_v56 = vmul.f32 %v3381_v36, %v606_v11  ;;  %v639_v4 = vmul.f32 %v3369_v7, %v606_v11  ;;  %v607_v12 = vmul.f32 %v3366_v33, %v606_v11 }
 0x1e1   : > { %v577_v29 = vadd.f32 %v2819_v38, %v576_v48  ;;  %v655_v40 = vmul.f32 %v3396_v34, %v606_v11  ;;  %v647_v60 = vmul.f32 %v3386_v1, %v606_v11  ;;  %v651_v5 = vmul.f32 %v3392_v42, %v606_v11 }
 0x1e2   : > { %v611_v13 = vmul.f32 %v2815_v27, %v610_v9  ;;  %731 = vxpose.xlu2.b32.cont [2/4] (short) %v643_v56, 128  ;;  %699 = vxpose.xlu1.b32.cont [2/4] (short) %v639_v4, 128  ;;  %v3513_v36 = vmul.f32 %v3420_v17, %v606_v11  ;;  %v3516_v33 = vmul.f32 %v3376_v43, %v606_v11  ;;  %v620_v7 = vor.u32 1.1754944e-38, %v619_v18 }
 0x1e3   : > { %2820 = vrcp.f32 %v577_v29  ;;  %667 = vxpose.xlu0.b32.cont [2/4] (short) %v607_v12, 128  ;;  %vm628_vm13 = vweird.f32 %v577_v29 }
 0x1e4   : > { %v612_v23 = vadd.f32 %v2815_v27, %v611_v13 }
 0x1e6   : > { %v616_v34 = vsel %vm615_vm10, %v2815_v27, %v612_v23 }
 0x1e7   : > { %v621_v1 = vsel %vm618_vm11, %v620_v7, %v616_v34 }
 0x1e8   : > { %v644_v42 = vmul.f32 %v3424_v46, %v621_v1  ;;  %v640_v28 = vmul.f32 %v3415_v3, %v621_v1  ;;  %v622_v37 = vmul.f32 %v3410_v58, %v621_v1  ;;  %v656_v10 = vmul.f32 %v3439_v50, %v621_v1 }
 0x1e9   : > { %v2821_v31 = vpop.eup %2820  ;;  %v648_v17 = vmul.f32 %v3427_v22, %v621_v1  ;;  %v652_v43 = vmul.f32 %v3432_v6, %v621_v1  ;;  %v3526_v54 = vmul.f32 %v3444_v52, %v621_v1  ;;  %v3529_v27 = vmul.f32 %v3457_v19, %v621_v1 }
 0x1ea   : > { %v624_v20 = vmul.f32 %v2821_v31, %v577_v29  ;;  %732 = vxpose.xlu2.b32.cont [3/4] (short) %v644_v42, 128  ;;  %700 = vxpose.xlu1.b32.cont [3/4] (short) %v640_v28, 128  ;;  %v634_v46 = vand.u32 2147483648, %v577_v29  ;;  %vm629_vm12 = vweird.f32 %v2821_v31  ;;  %v632_v50 = vand.u32 2147483647, %v577_v29 }
 0x1eb   : > { %668 = vxpose.xlu0.b32.cont [3/4] (short) %v622_v37, 128  ;;  %vm630_vm14 = vmor %vm628_vm13, %vm629_vm12 }
 0x1ec   : > { %v625_v3 = vsub.f32 1.0, %v624_v20  ;;  %v635_v22 = vor.u32 1.1754944e-38, %v634_v46  ;;  %vm633_vm15 = vcmp.eq.f32.partialorder %v632_v50, 8.507059e+37 }
 0x1ee   : > { %v626_v58 = vmul.f32 %v2821_v31, %v625_v3  ;;  %v3887_v3 = vld [vmem:[#allocation14_spill] sm:$0xff] }
 0x1f0   : > { %v627_v39 = vadd.f32 %v2821_v31, %v626_v58 }
 0x1f2   : > { %v631_v6 = vsel %vm630_vm14, %v2821_v31, %v627_v39 }
 0x1f3   : > { %v636_v52 = vsel %vm633_vm15, %v635_v22, %v631_v6 }
 0x1f4   : > { %v645_v48 = vmul.f32 %v3461_v35, %v636_v52  ;;  %v641_v19 = vmul.f32 %v3453_v14, %v636_v52  ;;  %v637_v11 = vmul.f32 %v3451_v41, %v636_v52  ;;  %v657_v9 = vmul.f32 %v3489_v32, %v636_v52 }
 0x1f5   : > { %v649_v18 = vmul.f32 %v3469_v44, %v636_v52  ;;  %v653_v56 = vmul.f32 %v3475_v16, %v636_v52  ;;  %v3538_v4 = vmul.f32 %v3499_v8, %v636_v52  ;;  %v3540_v12 = vmul.f32 %v2819_v38, %v636_v52 }
 0x1f6   : > { %733 = vxpose.xlu2.b32.end [4/4] (short) %v645_v48, 128  ;;  %701 = vxpose.xlu1.b32.end [4/4] (short) %v641_v19, 128 }
 0x1f7   : > { %669 = vxpose.xlu0.b32.end [4/4] (short) %v637_v11, 128 }
 0x25e   : > { %826 = vxpose.xlu2.b32.start [1/4] (short) %v3479_v21, 128  ;;  %762 = vxpose.xlu1.b32.start [1/4] (short) %v3482_v0, 128 }
 0x25f   : > { %794 = vxpose.xlu0.b32.start [1/4] (short) %v3485_v2, 128 }
 0x266   : > { %827 = vxpose.xlu2.b32.cont [2/4] (short) %v655_v40, 128  ;;  %763 = vxpose.xlu1.b32.cont [2/4] (short) %v647_v60, 128 }
 0x267   : > { %795 = vxpose.xlu0.b32.cont [2/4] (short) %v651_v5, 128 }
 0x26e   : > { %828 = vxpose.xlu2.b32.cont [3/4] (short) %v656_v10, 128  ;;  %764 = vxpose.xlu1.b32.cont [3/4] (short) %v648_v17, 128 }
 0x26f   : > { %796 = vxpose.xlu0.b32.cont [3/4] (short) %v652_v43, 128  ;;  %v3886_v43 = vld [vmem:[#allocation15_spill] sm:$0xff] }
 0x276   : > { %829 = vxpose.xlu2.b32.end [4/4] (short) %v657_v9, 128  ;;  %765 = vxpose.xlu1.b32.end [4/4] (short) %v649_v18, 128 }
 0x277   : > { %797 = vxpose.xlu0.b32.end [4/4] (short) %v653_v56, 128 }
 0x282   : > { %v714_v41 = vpop.trf.xlu1 }
 0x283   : > { %v682_v14 = vpop.trf.xlu0  ;;  %2524 = vmatmul.msk.f32.vlgmr.msrb.gmra.mxu0 %vm922_vm0, %v714_v41 }
 0x284   : > { %2508 = vmatmul.msk.f32.vlgmr.msra.gmra.mxu1 %vm922_vm0, %v682_v14 }
 0x285   : > { %1661 = vmatpush.msra.mxu1 %v3202_v55 }
 0x287   : > { %1662 = vmatpush.msra.mxu1 %v3199_v53 }
 0x289   : > { %1663 = vmatpush.msra.mxu1 %v3196_v51 }
 0x28a   : > { %v715_v35 = vpop.trf.xlu1 }
 0x28b   : > { %v683_v44 = vpop.trf.xlu0  ;;  %2525 = vmatmul.msk.f32.gmra.mxu0 %vm922_vm0, %v715_v35  ;;  %1664 = vmatpush.msra.mxu1 %v3191_v49 }
 0x28c   : > { %2509 = vmatmul.msk.f32.gmra.mxu1 %vm922_vm0, %v683_v44 }
 0x292   : > { %v716_v16 = vpop.trf.xlu1 }
 0x293   : > { %v684_v21 = vpop.trf.xlu0  ;;  %2526 = vmatmul.msk.f32.gmra.mxu0 %vm922_vm0, %v716_v16 }
 0x294   : > { %2510 = vmatmul.msk.f32.gmra.mxu1 %vm922_vm0, %v684_v21 }
 0x29a   : > { %v717_v0 = vpop.trf.xlu1 }
 0x29b   : > { %v685_v55 = vpop.trf.xlu0  ;;  %2527 = vmatmul.msk.f32.gmra.mxu0 %vm922_vm0, %v717_v0 }
 0x29c   : > { %2511 = vmatmul.msk.f32.gmra.mxu1 %vm922_vm0, %v685_v55 }
 0x2a2   : > { %v718_v51 = vpop.trf.xlu1 }
 0x2a3   : > { %v686_v53 = vpop.trf.xlu0  ;;  %2528 = vmatmul.msk.f32.gmra.mxu0 %vm922_vm0, %v718_v51 }
 0x2a4   : > { %2512 = vmatmul.msk.f32.gmra.mxu1 %vm922_vm0, %v686_v53 }
 0x2aa   : > { %v719_v49 = vpop.trf.xlu1 }
 0x2ab   : > { %v687_v2 = vpop.trf.xlu0  ;;  %2529 = vmatmul.msk.f32.gmra.mxu0 %vm922_vm0, %v719_v49 }
 0x2ac   : > { %2513 = vmatmul.msk.f32.gmra.mxu1 %vm922_vm0, %v687_v2 }
 0x2b2   : > { %v720_v32 = vpop.trf.xlu1 }
 0x2b3   : > { %v688_v8 = vpop.trf.xlu0  ;;  %2530 = vmatmul.msk.f32.vlgmr.msra.gmra.mxu2 %vm922_vm0, %v720_v32 }
 0x2b4   : > { %2514 = vmatmul.msk.f32.gmra.mxu1 %vm922_vm0, %v688_v8  ;;  %1774 = vmatpush.msra.mxu2 %v3214_v63 }
 0x2b6   : > { %1775 = vmatpush.msra.mxu2 %v3211_v61 }
 0x2b8   : > { %1776 = vmatpush.msra.mxu2 %v3208_v59 }
 0x2ba   : > { %v721_v38 = vpop.trf.xlu1  ;;  %1777 = vmatpush.msra.mxu2 %v3205_v57 }
 0x2bb   : > { %v689_v29 = vpop.trf.xlu0  ;;  %2531 = vmatmul.msk.f32.gmra.mxu2 %vm922_vm0, %v721_v38 }
 0x2bc   : > { %2515 = vmatmul.msk.f32.gmra.mxu1 %vm922_vm0, %v689_v29 }
 0x2c2   : > { %v722_v13 = vpop.trf.xlu1 }
 0x2c3   : > { %v690_v40 = vpop.trf.xlu0  ;;  %2532 = vmatmul.msk.f32.gmra.mxu2 %vm922_vm0, %v722_v13 }
 0x2c4   : > { %2516 = vmatmul.msk.f32.gmra.mxu1 %vm922_vm0, %v690_v40 }
 0x2ca   : > { %v723_v60 = vpop.trf.xlu1 }
 0x2cb   : > { %v691_v63 = vpop.trf.xlu0  ;;  %2533 = vmatmul.msk.f32.gmra.mxu2 %vm922_vm0, %v723_v60 }
 0x2cc   : > { %2517 = vmatmul.msk.f32.vlgmr.msra.gmra.mxu3 %vm922_vm0, %v691_v63 }
 0x2cd   : > { %1209 = vmatpush.msra.mxu3 %v3168_v30  ;;  %v746_v30 = vpop.trf.xlu2 }
 0x2cf   : > { %1210 = vmatpush.msra.mxu3 %v3165_v26 }
 0x2d1   : > { %1211 = vmatpush.msra.mxu3 %v3162_v25 }
 0x2d2   : > { %v724_v57 = vpop.trf.xlu1 }
 0x2d3   : > { %v692_v59 = vpop.trf.xlu0  ;;  %2534 = vmatmul.msk.f32.gmra.mxu2 %vm922_vm0, %v724_v57  ;;  %1212 = vmatpush.msra.mxu3 %v3159_v24 }
 0x2d4   : > { %2518 = vmatmul.msk.f32.gmra.mxu3 %vm922_vm0, %v692_v59 }
 0x2da   : > { %v725_v61 = vpop.trf.xlu1 }
 0x2db   : > { %v693_v5 = vpop.trf.xlu0  ;;  %2535 = vmatmul.msk.f32.gmra.mxu2 %vm922_vm0, %v725_v61 }
 0x2dc   : > { %2519 = vmatmul.msk.f32.gmra.mxu3 %vm922_vm0, %v693_v5 }
 0x2de   : > { %858 = vxpose.xlu1.b32.start [1/4] (short) %v3492_v15, 128 }
 0x2df   : > { %890 = vxpose.xlu0.b32.start [1/4] (short) %v3495_v62, 128  ;;  %v747_v62 = vpop.trf.xlu2 }
 0x2e2   : > { %v726_v26 = vpop.trf.xlu1 }
 0x2e3   : > { %v694_v25 = vpop.trf.xlu0  ;;  %2536 = vmatmul.msk.f32.gmra.mxu2 %vm922_vm0, %v726_v26 }
 0x2e4   : > { %2520 = vmatmul.msk.f32.gmra.mxu3 %vm922_vm0, %v694_v25 }
 0x2e6   : > { %859 = vxpose.xlu1.b32.cont [2/4] (short) %v3513_v36, 128 }
 0x2e7   : > { %891 = vxpose.xlu0.b32.cont [2/4] (short) %v3516_v33, 128  ;;  %v748_v33 = vpop.trf.xlu2 }
 0x2ea   : > { %v727_v24 = vpop.trf.xlu1 }
 0x2eb   : > { %v695_v23 = vpop.trf.xlu0  ;;  %2537 = vmatmul.msk.f32.gmra.mxu2 %vm922_vm0, %v727_v24 }
 0x2ec   : > { %2521 = vmatmul.msk.f32.gmra.mxu3 %vm922_vm0, %v695_v23 }
 0x2ee   : > { %860 = vxpose.xlu1.b32.cont [3/4] (short) %v3526_v54, 128 }
 0x2ef   : > { %892 = vxpose.xlu0.b32.cont [3/4] (short) %v3529_v27, 128  ;;  %v749_v37 = vpop.trf.xlu2 }
 0x2f2   : > { %v728_v15 = vpop.trf.xlu1 }
 0x2f3   : > { %v696_v7 = vpop.trf.xlu0  ;;  %2538 = vmatmul.msk.f32.gmra.mxu2 %vm922_vm0, %v728_v15 }
 0x2f4   : > { %2522 = vmatmul.msk.f32.gmra.mxu3 %vm922_vm0, %v696_v7 }
 0x2f6   : > { %861 = vxpose.xlu1.b32.end [4/4] (short) %v3538_v4, 128 }
 0x2f7   : > { %893 = vxpose.xlu0.b32.end [4/4] (short) %v3540_v12, 128  ;;  %v750_v27 = vpop.trf.xlu2 }
 0x2fa   : > { %v729_v36 = vpop.trf.xlu1 }
 0x2fb   : > { %v697_v34 = vpop.trf.xlu0 }
 0x2fc   : > { %2523 = vmatmul.msk.f32.gmra.mxu3 %vm922_vm0, %v697_v34 }
 0x2ff   : > { %v751_v58 = vpop.trf.xlu2 }
 0x300   : > { %v1101_v1 = vpop.f32.mrf.mxu0 }
 0x301   : > { %v988_v42 = vpop.f32.mrf.mxu1  ;;  %1847 = vst [vmem:[%s3597_s11 + $0x80] sm:$0xff] %v1101_v1 }
 0x302   : > { %1831 = vst [vmem:[%s3597_s11] sm:$0xff] %v988_v42  ;;  %v778_v28 = vpop.trf.xlu1 }
 0x303   : > { %v810_v10 = vpop.trf.xlu0  ;;  %2556 = vmatmul.msk.f32.vlgmr.msrb.gmra.mxu1 %vm922_vm0, %v778_v28 }
 0x304   : > { %2539 = vmatmul.msk.f32.vlgmr.msrb.gmra.mxu3 %vm922_vm0, %v729_v36  ;;  %2572 = vmatmul.msk.f32.vlgmr.msrb.gmra.mxu2 %vm922_vm0, %v810_v10 }
 0x305   : > { %1548 = vmatpush.msrb.mxu3 %v3188_v47 }
 0x307   : > { %1549 = vmatpush.msrb.mxu3 %v3185_v45  ;;  %v752_v52 = vpop.trf.xlu2 }
 0x308   : > { %v1104_v31 = vpop.f32.mrf.mxu0 }
 0x309   : > { %v991_v17 = vpop.f32.mrf.mxu1  ;;  %1848 = vst [vmem:[%s3597_s11 + $0x88] sm:$0xff] %v1104_v31  ;;  %1550 = vmatpush.msrb.mxu3 %v3886_v43 }
 0x30a   : > { %1832 = vst [vmem:[%s3597_s11 + $0x8] sm:$0xff] %v991_v17  ;;  %v779_v54 = vpop.trf.xlu1 }
 0x30b   : > { %v811_v20 = vpop.trf.xlu0  ;;  %2557 = vmatmul.msk.f32.gmra.mxu1 %vm922_vm0, %v779_v54  ;;  %1551 = vmatpush.msrb.mxu3 %v3887_v3 }
 0x30c   : > { %2540 = vmatmul.msk.f32.vlgmr.msra.gmra.mxu3 %vm922_vm0, %v746_v30  ;;  %2573 = vmatmul.msk.f32.gmra.mxu2 %vm922_vm0, %v811_v20 }
 0x30f   : > { %v753_v18 = vpop.trf.xlu2 }
 0x310   : > { %v1107_v45 = vpop.f32.mrf.mxu0 }
 0x311   : > { %v994_v47 = vpop.f32.mrf.mxu1  ;;  %1849 = vst [vmem:[%s3597_s11 + $0x90] sm:$0xff] %v1107_v45 }
 0x312   : > { %1833 = vst [vmem:[%s3597_s11 + $0x10] sm:$0xff] %v994_v47  ;;  %v780_v46 = vpop.trf.xlu1 }
 0x313   : > { %v812_v50 = vpop.trf.xlu0  ;;  %2558 = vmatmul.msk.f32.gmra.mxu1 %vm922_vm0, %v780_v46 }
 0x314   : > { %2541 = vmatmul.msk.f32.gmra.mxu3 %vm922_vm0, %v747_v62  ;;  %2574 = vmatmul.msk.f32.gmra.mxu2 %vm922_vm0, %v812_v50 }
 0x317   : > { %v754_v14 = vpop.trf.xlu2 }
 0x318   : > { %v1110_v39 = vpop.f32.mrf.mxu0 }
 0x319   : > { %v997_v22 = vpop.f32.mrf.mxu1  ;;  %1850 = vst [vmem:[%s3597_s11 + $0x98] sm:$0xff] %v1110_v39 }
 0x31a   : > { %1834 = vst [vmem:[%s3597_s11 + $0x18] sm:$0xff] %v997_v22  ;;  %v781_v6 = vpop.trf.xlu1 }
 0x31b   : > { %v813_v48 = vpop.trf.xlu0  ;;  %2559 = vmatmul.msk.f32.gmra.mxu1 %vm922_vm0, %v781_v6 }
 0x31c   : > { %2542 = vmatmul.msk.f32.gmra.mxu3 %vm922_vm0, %v748_v33  ;;  %2575 = vmatmul.msk.f32.gmra.mxu2 %vm922_vm0, %v813_v48 }
 0x31f   : > { %v755_v21 = vpop.trf.xlu2 }
 0x320   : > { %v1113_v19 = vpop.f32.mrf.mxu0 }
 0x321   : > { %v1000_v11 = vpop.f32.mrf.mxu1  ;;  %1851 = vst [vmem:[%s3597_s11 + $0xa0] sm:$0xff] %v1113_v19 }
 0x322   : > { %1835 = vst [vmem:[%s3597_s11 + $0x20] sm:$0xff] %v1000_v11  ;;  %v782_v9 = vpop.trf.xlu1 }
 0x323   : > { %v814_v56 = vpop.trf.xlu0  ;;  %2560 = vmatmul.msk.f32.gmra.mxu1 %vm922_vm0, %v782_v9 }
 0x324   : > { %2543 = vmatmul.msk.f32.gmra.mxu3 %vm922_vm0, %v749_v37  ;;  %2576 = vmatmul.msk.f32.gmra.mxu2 %vm922_vm0, %v814_v56 }
 0x327   : > { %v756_v49 = vpop.trf.xlu2 }
 0x328   : > { %v1116_v4 = vpop.f32.mrf.mxu0 }
 0x329   : > { %v1003_v12 = vpop.f32.mrf.mxu1  ;;  %1852 = vst [vmem:[%s3597_s11 + $0xa8] sm:$0xff] %v1116_v4 }
 0x32a   : > { %1836 = vst [vmem:[%s3597_s11 + $0x28] sm:$0xff] %v1003_v12  ;;  %v783_v41 = vpop.trf.xlu1 }
 0x32b   : > { %v815_v35 = vpop.trf.xlu0  ;;  %2561 = vmatmul.msk.f32.gmra.mxu1 %vm922_vm0, %v783_v41 }
 0x32c   : > { %2544 = vmatmul.msk.f32.gmra.mxu3 %vm922_vm0, %v750_v27  ;;  %2577 = vmatmul.msk.f32.gmra.mxu2 %vm922_vm0, %v815_v35 }
 0x32f   : > { %v757_v29 = vpop.trf.xlu2 }
 0x331   : > { %v1006_v44 = vpop.f32.mrf.mxu1 }
 0x332   : > { %1837 = vst [vmem:[%s3597_s11 + $0x30] sm:$0xff] %v1006_v44  ;;  %v784_v16 = vpop.trf.xlu1 }
 0x333   : > { %v816_v0 = vpop.trf.xlu0  ;;  %2562 = vmatmul.msk.f32.gmra.mxu1 %vm922_vm0, %v784_v16 }
 0x334   : > { %2545 = vmatmul.msk.f32.gmra.mxu3 %vm922_vm0, %v751_v58  ;;  %2578 = vmatmul.msk.f32.gmra.mxu2 %vm922_vm0, %v816_v0 }
 0x336   : > { %v1119_v55 = vpop.f32.mrf.mxu2 }
 0x337   : > { %1853 = vst [vmem:[%s3597_s11 + $0xb0] sm:$0xff] %v1119_v55  ;;  %v758_v63 = vpop.trf.xlu2 }
 0x339   : > { %v1009_v51 = vpop.f32.mrf.mxu1 }
 0x33a   : > { %1838 = vst [vmem:[%s3597_s11 + $0x38] sm:$0xff] %v1009_v51  ;;  %v785_v53 = vpop.trf.xlu1 }
 0x33b   : > { %v817_v2 = vpop.trf.xlu0  ;;  %2563 = vmatmul.msk.f32.gmra.mxu1 %vm922_vm0, %v785_v53 }
 0x33c   : > { %2546 = vmatmul.msk.f32.gmra.mxu3 %vm922_vm0, %v752_v52  ;;  %2579 = vmatmul.msk.f32.gmra.mxu2 %vm922_vm0, %v817_v2 }
 0x33e   : > { %v1122_v32 = vpop.f32.mrf.mxu2 }
 0x33f   : > { %1854 = vst [vmem:[%s3597_s11 + $0xb8] sm:$0xff] %v1122_v32  ;;  %v759_v26 = vpop.trf.xlu2 }
 0x341   : > { %v1012_v8 = vpop.f32.mrf.mxu1 }
 0x342   : > { %1839 = vst [vmem:[%s3597_s11 + $0x40] sm:$0xff] %v1012_v8  ;;  %v786_v38 = vpop.trf.xlu1 }
 0x343   : > { %v818_v13 = vpop.trf.xlu0  ;;  %2564 = vmatmul.msk.f32.gmra.mxu1 %vm922_vm0, %v786_v38 }
 0x344   : > { %2547 = vmatmul.msk.f32.gmra.mxu3 %vm922_vm0, %v753_v18  ;;  %2580 = vmatmul.msk.f32.gmra.mxu2 %vm922_vm0, %v818_v13 }
 0x346   : > { %v1125_v40 = vpop.f32.mrf.mxu2 }
 0x347   : > { %1855 = vst [vmem:[%s3597_s11 + $0xc0] sm:$0xff] %v1125_v40  ;;  %v760_v15 = vpop.trf.xlu2 }
 0x34a   : > { %v787_v60 = vpop.trf.xlu1 }
 0x34b   : > { %v819_v57 = vpop.trf.xlu0  ;;  %2565 = vmatmul.msk.f32.gmra.mxu1 %vm922_vm0, %v787_v60 }
 0x34c   : > { %2548 = vmatmul.msk.f32.gmra.mxu3 %vm922_vm0, %v754_v14  ;;  %2581 = vmatmul.msk.f32.gmra.mxu2 %vm922_vm0, %v819_v57 }
 0x34e   : > { %v1128_v59 = vpop.f32.mrf.mxu2 }
 0x34f   : > { %v1015_v61 = vpop.f32.mrf.mxu3  ;;  %1856 = vst [vmem:[%s3597_s11 + $0xc8] sm:$0xff] %v1128_v59  ;;  %v761_v34 = vpop.trf.xlu2 }
 0x350   : > { %1840 = vst [vmem:[%s3597_s11 + $0x48] sm:$0xff] %v1015_v61 }
 0x352   : > { %v788_v5 = vpop.trf.xlu1 }
 0x353   : > { %v820_v25 = vpop.trf.xlu0  ;;  %2566 = vmatmul.msk.f32.gmra.mxu1 %vm922_vm0, %v788_v5 }
 0x354   : > { %2549 = vmatmul.msk.f32.gmra.mxu3 %vm922_vm0, %v755_v21  ;;  %2582 = vmatmul.msk.f32.gmra.mxu2 %vm922_vm0, %v820_v25 }
 0x356   : > { %v1131_v24 = vpop.f32.mrf.mxu2 }
 0x357   : > { %v1018_v30 = vpop.f32.mrf.mxu3  ;;  %1857 = vst [vmem:[%s3597_s11 + $0xd0] sm:$0xff] %v1131_v24  ;;  %v842_v10 = vpop.trf.xlu2 }
 0x358   : > { %1841 = vst [vmem:[%s3597_s11 + $0x50] sm:$0xff] %v1018_v30 }
 0x35a   : > { %v789_v23 = vpop.trf.xlu1 }
 0x35b   : > { %v821_v62 = vpop.trf.xlu0  ;;  %2567 = vmatmul.msk.f32.gmra.mxu1 %vm922_vm0, %v789_v23 }
 0x35c   : > { %2550 = vmatmul.msk.f32.gmra.mxu3 %vm922_vm0, %v756_v49  ;;  %2583 = vmatmul.msk.f32.gmra.mxu2 %vm922_vm0, %v821_v62 }
 0x35e   : > { %v1134_v7 = vpop.f32.mrf.mxu2 }
 0x35f   : > { %v1021_v36 = vpop.f32.mrf.mxu3  ;;  %1858 = vst [vmem:[%s3597_s11 + $0xd8] sm:$0xff] %v1134_v7  ;;  %v843_v20 = vpop.trf.xlu2 }
 0x360   : > { %1842 = vst [vmem:[%s3597_s11 + $0x58] sm:$0xff] %v1021_v36 }
 0x362   : > { %v790_v33 = vpop.trf.xlu1 }
 0x363   : > { %v822_v1 = vpop.trf.xlu0  ;;  %2568 = vmatmul.msk.f32.gmra.mxu1 %vm922_vm0, %v790_v33 }
 0x364   : > { %2551 = vmatmul.msk.f32.gmra.mxu3 %vm922_vm0, %v757_v29  ;;  %2584 = vmatmul.msk.f32.gmra.mxu2 %vm922_vm0, %v822_v1 }
 0x366   : > { %v1137_v42 = vpop.f32.mrf.mxu2 }
 0x367   : > { %v1024_v28 = vpop.f32.mrf.mxu3  ;;  %1859 = vst [vmem:[%s3597_s11 + $0xe0] sm:$0xff] %v1137_v42  ;;  %v844_v58 = vpop.trf.xlu2 }
 0x368   : > { %1843 = vst [vmem:[%s3597_s11 + $0x60] sm:$0xff] %v1024_v28 }
 0x36a   : > { %v791_v37 = vpop.trf.xlu1 }
 0x36b   : > { %v823_v31 = vpop.trf.xlu0  ;;  %2569 = vmatmul.msk.f32.gmra.mxu1 %vm922_vm0, %v791_v37 }
 0x36c   : > { %2552 = vmatmul.msk.f32.gmra.mxu3 %vm922_vm0, %v758_v63  ;;  %2585 = vmatmul.msk.f32.gmra.mxu2 %vm922_vm0, %v823_v31 }
 0x36e   : > { %v1140_v17 = vpop.f32.mrf.mxu2 }
 0x36f   : > { %v1027_v43 = vpop.f32.mrf.mxu3  ;;  %1860 = vst [vmem:[%s3597_s11 + $0xe8] sm:$0xff] %v1140_v17  ;;  %v845_v11 = vpop.trf.xlu2 }
 0x370   : > { %1844 = vst [vmem:[%s3597_s11 + $0x68] sm:$0xff] %v1027_v43 }
 0x372   : > { %v792_v54 = vpop.trf.xlu1 }
 0x373   : > { %v824_v27 = vpop.trf.xlu0  ;;  %2570 = vmatmul.msk.f32.gmra.mxu1 %vm922_vm0, %v792_v54 }
 0x374   : > { %2553 = vmatmul.msk.f32.gmra.mxu3 %vm922_vm0, %v759_v26  ;;  %2586 = vmatmul.msk.f32.gmra.mxu2 %vm922_vm0, %v824_v27 }
 0x376   : > { %v1143_v3 = vpop.f32.mrf.mxu2 }
 0x377   : > { %v1030_v45 = vpop.f32.mrf.mxu3  ;;  %1861 = vst [vmem:[%s3597_s11 + $0xf0] sm:$0xff] %v1143_v3  ;;  %v846_v14 = vpop.trf.xlu2 }
 0x378   : > { %1845 = vst [vmem:[%s3597_s11 + $0x70] sm:$0xff] %v1030_v45 }
 0x37a   : > { %v793_v47 = vpop.trf.xlu1 }
 0x37b   : > { %v825_v46 = vpop.trf.xlu0  ;;  %2571 = vmatmul.msk.f32.gmra.mxu1 %vm922_vm0, %v793_v47 }
 0x37c   : > { %2554 = vmatmul.msk.f32.gmra.mxu3 %vm922_vm0, %v760_v15  ;;  %2587 = vmatmul.msk.f32.gmra.mxu2 %vm922_vm0, %v825_v46 }
 0x37f   : > { %v1033_v50 = vpop.f32.mrf.mxu3  ;;  %v847_v51 = vpop.trf.xlu2 }
 0x380   : > { %1846 = vst [vmem:[%s3597_s11 + $0x78] sm:$0xff] %v1033_v50  ;;  %v1327_v39 = vpop.f32.mrf.mxu1 }
 0x381   : > { %1879 = vst [vmem:[%s3597_s11 + $0x180] sm:$0xff] %v1327_v39 }
 0x382   : > { %v874_v22 = vpop.trf.xlu1 }
 0x383   : > { %v906_v6 = vpop.trf.xlu0  ;;  %2604 = vmatmul.msk.f32.vlgmr.msra.gmra.mxu1 %vm922_vm0, %v874_v22 }
 0x384   : > { %2555 = vmatmul.msk.f32.gmra.mxu3 %vm922_vm0, %v761_v34  ;;  %2620 = vmatmul.msk.f32.vlgmr.msra.gmra.mxu2 %vm922_vm0, %v906_v6 }
 0x387   : > { %v1146_v52 = vpop.f32.mrf.mxu3  ;;  %v1440_v48 = vpop.f32.mrf.mxu2 }
 0x388   : > { %1862 = vst [vmem:[%s3597_s11 + $0xf8] sm:$0xff] %v1146_v52  ;;  %v1330_v19 = vpop.f32.mrf.mxu1  ;;  %v848_v38 = vpop.trf.xlu2 }
 0x389   : > { %1895 = vst [vmem:[%s3597_s11 + $0x200] sm:$0xff] %v1440_v48 }
 0x38a   : > { %1880 = vst [vmem:[%s3597_s11 + $0x188] sm:$0xff] %v1330_v19  ;;  %v875_v9 = vpop.trf.xlu1 }
 0x38b   : > { %v907_v18 = vpop.trf.xlu0  ;;  %2605 = vmatmul.msk.f32.gmra.mxu1 %vm922_vm0, %v875_v9 }
 0x38c   : > { %2588 = vmatmul.msk.f32.vlgmr.msrb.gmra.mxu3 %vm922_vm0, %v842_v10  ;;  %2621 = vmatmul.msk.f32.gmra.mxu2 %vm922_vm0, %v907_v18 }
 0x38f   : > { %v1214_v56 = vpop.f32.mrf.mxu3  ;;  %v1443_v4 = vpop.f32.mrf.mxu2 }
 0x390   : > { %1863 = vst [vmem:[%s3597_s11 + $0x100] sm:$0xff] %v1214_v56  ;;  %v1333_v12 = vpop.f32.mrf.mxu1  ;;  %v849_v5 = vpop.trf.xlu2 }
 0x391   : > { %1896 = vst [vmem:[%s3597_s11 + $0x208] sm:$0xff] %v1443_v4 }
 0x392   : > { %1881 = vst [vmem:[%s3597_s11 + $0x190] sm:$0xff] %v1333_v12  ;;  %v876_v41 = vpop.trf.xlu1 }
 0x393   : > { %v908_v35 = vpop.trf.xlu0  ;;  %2606 = vmatmul.msk.f32.gmra.mxu1 %vm922_vm0, %v876_v41 }
 0x394   : > { %2589 = vmatmul.msk.f32.gmra.mxu3 %vm922_vm0, %v843_v20  ;;  %2622 = vmatmul.msk.f32.gmra.mxu2 %vm922_vm0, %v908_v35 }
 0x397   : > { %v1217_v44 = vpop.f32.mrf.mxu3  ;;  %v1446_v16 = vpop.f32.mrf.mxu2 }
 0x398   : > { %1864 = vst [vmem:[%s3597_s11 + $0x108] sm:$0xff] %v1217_v44  ;;  %v1336_v21 = vpop.f32.mrf.mxu1  ;;  %v850_v62 = vpop.trf.xlu2 }
 0x399   : > { %1897 = vst [vmem:[%s3597_s11 + $0x210] sm:$0xff] %v1446_v16 }
 0x39a   : > { %1882 = vst [vmem:[%s3597_s11 + $0x198] sm:$0xff] %v1336_v21  ;;  %v877_v0 = vpop.trf.xlu1 }
 0x39b   : > { %v909_v55 = vpop.trf.xlu0  ;;  %2607 = vmatmul.msk.f32.gmra.mxu1 %vm922_vm0, %v877_v0 }
 0x39c   : > { %2590 = vmatmul.msk.f32.gmra.mxu3 %vm922_vm0, %v844_v58  ;;  %2623 = vmatmul.msk.f32.gmra.mxu2 %vm922_vm0, %v909_v55 }
 0x39f   : > { %v1220_v53 = vpop.f32.mrf.mxu3  ;;  %v1449_v49 = vpop.f32.mrf.mxu2 }
 0x3a0   : > { %1865 = vst [vmem:[%s3597_s11 + $0x110] sm:$0xff] %v1220_v53  ;;  %v1339_v2 = vpop.f32.mrf.mxu1  ;;  %v851_v28 = vpop.trf.xlu2 }
 0x3a1   : > { %1898 = vst [vmem:[%s3597_s11 + $0x218] sm:$0xff] %v1449_v49 }
 0x3a2   : > { %1883 = vst [vmem:[%s3597_s11 + $0x1a0] sm:$0xff] %v1339_v2  ;;  %v878_v32 = vpop.trf.xlu1 }
 0x3a3   : > { %v910_v8 = vpop.trf.xlu0  ;;  %2608 = vmatmul.msk.f32.gmra.mxu1 %vm922_vm0, %v878_v32 }
 0x3a4   : > { %2591 = vmatmul.msk.f32.gmra.mxu3 %vm922_vm0, %v845_v11  ;;  %2624 = vmatmul.msk.f32.gmra.mxu2 %vm922_vm0, %v910_v8 }
 0x3a7   : > { %v1223_v29 = vpop.f32.mrf.mxu3  ;;  %v1452_v13 = vpop.f32.mrf.mxu2 }
 0x3a8   : > { %1866 = vst [vmem:[%s3597_s11 + $0x118] sm:$0xff] %v1223_v29  ;;  %v1342_v40 = vpop.f32.mrf.mxu1  ;;  %v852_v54 = vpop.trf.xlu2 }
 0x3a9   : > { %1899 = vst [vmem:[%s3597_s11 + $0x220] sm:$0xff] %v1452_v13 }
 0x3aa   : > { %1884 = vst [vmem:[%s3597_s11 + $0x1a8] sm:$0xff] %v1342_v40  ;;  %v879_v60 = vpop.trf.xlu1 }
 0x3ab   : > { %v911_v63 = vpop.trf.xlu0  ;;  %2609 = vmatmul.msk.f32.gmra.mxu1 %vm922_vm0, %v879_v60 }
 0x3ac   : > { %2592 = vmatmul.msk.f32.gmra.mxu3 %vm922_vm0, %v846_v14  ;;  %2625 = vmatmul.msk.f32.gmra.mxu2 %vm922_vm0, %v911_v63 }
 0x3af   : > { %v1226_v57 = vpop.f32.mrf.mxu3  ;;  %v1455_v59 = vpop.f32.mrf.mxu2 }
 0x3b0   : > { %1867 = vst [vmem:[%s3597_s11 + $0x120] sm:$0xff] %v1226_v57  ;;  %v1345_v61 = vpop.f32.mrf.mxu1  ;;  %v853_v50 = vpop.trf.xlu2 }
 0x3b1   : > { %1900 = vst [vmem:[%s3597_s11 + $0x228] sm:$0xff] %v1455_v59 }
 0x3b2   : > { %1885 = vst [vmem:[%s3597_s11 + $0x1b0] sm:$0xff] %v1345_v61  ;;  %v880_v26 = vpop.trf.xlu1 }
 0x3b3   : > { %v912_v25 = vpop.trf.xlu0  ;;  %2610 = vmatmul.msk.f32.gmra.mxu1 %vm922_vm0, %v880_v26 }
 0x3b4   : > { %2593 = vmatmul.msk.f32.gmra.mxu3 %vm922_vm0, %v847_v51  ;;  %2626 = vmatmul.msk.f32.gmra.mxu2 %vm922_vm0, %v912_v25 }
 0x3b7   : > { %v1229_v24 = vpop.f32.mrf.mxu3  ;;  %v1458_v30 = vpop.f32.mrf.mxu2 }
 0x3b8   : > { %1868 = vst [vmem:[%s3597_s11 + $0x128] sm:$0xff] %v1229_v24  ;;  %v1348_v23 = vpop.f32.mrf.mxu1  ;;  %v854_v11 = vpop.trf.xlu2 }
 0x3b9   : > { %1901 = vst [vmem:[%s3597_s11 + $0x230] sm:$0xff] %v1458_v30 }
 0x3ba   : > { %1886 = vst [vmem:[%s3597_s11 + $0x1b8] sm:$0xff] %v1348_v23  ;;  %v881_v15 = vpop.trf.xlu1 }
 0x3bb   : > { %v913_v7 = vpop.trf.xlu0  ;;  %2611 = vmatmul.msk.f32.gmra.mxu1 %vm922_vm0, %v881_v15 }
 0x3bc   : > { %2594 = vmatmul.msk.f32.gmra.mxu3 %vm922_vm0, %v848_v38  ;;  %2627 = vmatmul.msk.f32.gmra.mxu2 %vm922_vm0, %v913_v7 }
 0x3bf   : > { %v1232_v36 = vpop.f32.mrf.mxu3  ;;  %v1461_v33 = vpop.f32.mrf.mxu2 }
 0x3c0   : > { %1869 = vst [vmem:[%s3597_s11 + $0x130] sm:$0xff] %v1232_v36  ;;  %v1351_v34 = vpop.f32.mrf.mxu1  ;;  %v855_v35 = vpop.trf.xlu2 }
 0x3c1   : > { %1902 = vst [vmem:[%s3597_s11 + $0x238] sm:$0xff] %v1461_v33 }
 0x3c2   : > { %1887 = vst [vmem:[%s3597_s11 + $0x1c0] sm:$0xff] %v1351_v34  ;;  %v882_v1 = vpop.trf.xlu1 }
 0x3c3   : > { %v914_v42 = vpop.trf.xlu0  ;;  %2612 = vmatmul.msk.f32.gmra.mxu1 %vm922_vm0, %v882_v1 }
 0x3c4   : > { %2595 = vmatmul.msk.f32.gmra.mxu3 %vm922_vm0, %v849_v5  ;;  %2628 = vmatmul.msk.f32.gmra.mxu2 %vm922_vm0, %v914_v42 }
 0x3c7   : > { %v1235_v37 = vpop.f32.mrf.mxu3  ;;  %v1464_v10 = vpop.f32.mrf.mxu2 }
 0x3c8   : > { %1870 = vst [vmem:[%s3597_s11 + $0x138] sm:$0xff] %v1235_v37  ;;  %v1354_v31 = vpop.f32.mrf.mxu1  ;;  %v856_v51 = vpop.trf.xlu2 }
 0x3c9   : > { %1903 = vst [vmem:[%s3597_s11 + $0x240] sm:$0xff] %v1464_v10 }
 0x3ca   : > { %1888 = vst [vmem:[%s3597_s11 + $0x1c8] sm:$0xff] %v1354_v31  ;;  %v883_v17 = vpop.trf.xlu1 }
 0x3cb   : > { %v915_v43 = vpop.trf.xlu0  ;;  %2613 = vmatmul.msk.f32.gmra.mxu1 %vm922_vm0, %v883_v17 }
 0x3cc   : > { %2596 = vmatmul.msk.f32.gmra.mxu3 %vm922_vm0, %v850_v62  ;;  %2629 = vmatmul.msk.f32.gmra.mxu2 %vm922_vm0, %v915_v43 }
 0x3cf   : > { %v1238_v27 = vpop.f32.mrf.mxu3  ;;  %v1467_v20 = vpop.f32.mrf.mxu2 }
 0x3d0   : > { %1871 = vst [vmem:[%s3597_s11 + $0x140] sm:$0xff] %v1238_v27  ;;  %v1357_v3 = vpop.f32.mrf.mxu1  ;;  %v857_v40 = vpop.trf.xlu2 }
 0x3d1   : > { %1904 = vst [vmem:[%s3597_s11 + $0x248] sm:$0xff] %v1467_v20 }
 0x3d2   : > { %1889 = vst [vmem:[%s3597_s11 + $0x1d0] sm:$0xff] %v1357_v3  ;;  %v884_v45 = vpop.trf.xlu1 }
 0x3d3   : > { %v916_v47 = vpop.trf.xlu0  ;;  %2614 = vmatmul.msk.f32.gmra.mxu1 %vm922_vm0, %v884_v45 }
 0x3d4   : > { %2597 = vmatmul.msk.f32.gmra.mxu3 %vm922_vm0, %v851_v28  ;;  %2630 = vmatmul.msk.f32.gmra.mxu2 %vm922_vm0, %v916_v47 }
 0x3d7   : > { %v1241_v46 = vpop.f32.mrf.mxu3  ;;  %v1470_v58 = vpop.f32.mrf.mxu2 }
 0x3d8   : > { %1872 = vst [vmem:[%s3597_s11 + $0x148] sm:$0xff] %v1241_v46  ;;  %v1360_v39 = vpop.f32.mrf.mxu1 }
 0x3d9   : > { %1905 = vst [vmem:[%s3597_s11 + $0x250] sm:$0xff] %v1470_v58 }
 0x3da   : > { %1890 = vst [vmem:[%s3597_s11 + $0x1d8] sm:$0xff] %v1360_v39  ;;  %v885_v22 = vpop.trf.xlu1 }
 0x3db   : > { %v917_v6 = vpop.trf.xlu0  ;;  %2615 = vmatmul.msk.f32.gmra.mxu1 %vm922_vm0, %v885_v22 }
 0x3dc   : > { %2598 = vmatmul.msk.f32.gmra.mxu3 %vm922_vm0, %v852_v54  ;;  %2631 = vmatmul.msk.f32.gmra.mxu2 %vm922_vm0, %v917_v6 }
 0x3df   : > { %v1244_v52 = vpop.f32.mrf.mxu3  ;;  %v1473_v48 = vpop.f32.mrf.mxu2 }
 0x3e0   : > { %1873 = vst [vmem:[%s3597_s11 + $0x150] sm:$0xff] %v1244_v52  ;;  %v1363_v19 = vpop.f32.mrf.mxu1 }
 0x3e1   : > { %1906 = vst [vmem:[%s3597_s11 + $0x258] sm:$0xff] %v1473_v48 }
 0x3e2   : > { %1891 = vst [vmem:[%s3597_s11 + $0x1e0] sm:$0xff] %v1363_v19  ;;  %v886_v9 = vpop.trf.xlu1 }
 0x3e3   : > { %v918_v18 = vpop.trf.xlu0  ;;  %2616 = vmatmul.msk.f32.gmra.mxu1 %vm922_vm0, %v886_v9 }
 0x3e4   : > { %2599 = vmatmul.msk.f32.gmra.mxu3 %vm922_vm0, %v853_v50  ;;  %2632 = vmatmul.msk.f32.gmra.mxu2 %vm922_vm0, %v918_v18 }
 0x3e7   : > { %v1247_v56 = vpop.f32.mrf.mxu3  ;;  %v1476_v4 = vpop.f32.mrf.mxu2 }
 0x3e8   : > { %1874 = vst [vmem:[%s3597_s11 + $0x158] sm:$0xff] %v1247_v56  ;;  %v1366_v12 = vpop.f32.mrf.mxu1 }
 0x3e9   : > { %1907 = vst [vmem:[%s3597_s11 + $0x260] sm:$0xff] %v1476_v4 }
 0x3ea   : > { %1892 = vst [vmem:[%s3597_s11 + $0x1e8] sm:$0xff] %v1366_v12  ;;  %v887_v41 = vpop.trf.xlu1 }
 0x3eb   : > { %v919_v14 = vpop.trf.xlu0  ;;  %2617 = vmatmul.msk.f32.gmra.mxu1 %vm922_vm0, %v887_v41 }
 0x3ec   : > { %2600 = vmatmul.msk.f32.gmra.mxu3 %vm922_vm0, %v854_v11  ;;  %2633 = vmatmul.msk.f32.gmra.mxu2 %vm922_vm0, %v919_v14 }
 0x3ef   : > { %v1250_v44 = vpop.f32.mrf.mxu3  ;;  %v1479_v16 = vpop.f32.mrf.mxu2 }
 0x3f0   : > { %1875 = vst [vmem:[%s3597_s11 + $0x160] sm:$0xff] %v1250_v44  ;;  %v1369_v21 = vpop.f32.mrf.mxu1 }
 0x3f1   : > { %1908 = vst [vmem:[%s3597_s11 + $0x268] sm:$0xff] %v1479_v16 }
 0x3f2   : > { %1893 = vst [vmem:[%s3597_s11 + $0x1f0] sm:$0xff] %v1369_v21  ;;  %v888_v0 = vpop.trf.xlu1 }
 0x3f3   : > { %v920_v55 = vpop.trf.xlu0  ;;  %2618 = vmatmul.msk.f32.gmra.mxu1 %vm922_vm0, %v888_v0 }
 0x3f4   : > { %2601 = vmatmul.msk.f32.gmra.mxu3 %vm922_vm0, %v855_v35  ;;  %2634 = vmatmul.msk.f32.gmra.mxu2 %vm922_vm0, %v920_v55 }
 0x3f7   : > { %v1253_v53 = vpop.f32.mrf.mxu3  ;;  %v1482_v49 = vpop.f32.mrf.mxu2 }
 0x3f8   : > { %1876 = vst [vmem:[%s3597_s11 + $0x168] sm:$0xff] %v1253_v53  ;;  %v1372_v2 = vpop.f32.mrf.mxu1 }
 0x3f9   : > { %1909 = vst [vmem:[%s3597_s11 + $0x270] sm:$0xff] %v1482_v49 }
 0x3fa   : > { %1894 = vst [vmem:[%s3597_s11 + $0x1f8] sm:$0xff] %v1372_v2  ;;  %v889_v32 = vpop.trf.xlu1 }
 0x3fb   : > { %v921_v8 = vpop.trf.xlu0  ;;  %2619 = vmatmul.msk.f32.gmra.mxu1 %vm922_vm0, %v889_v32 }
 0x3fc   : > { %2602 = vmatmul.msk.f32.gmra.mxu3 %vm922_vm0, %v856_v51  ;;  %2635 = vmatmul.msk.f32.gmra.mxu2 %vm922_vm0, %v921_v8 }
 0x3ff   : > { %v1256_v38 = vpop.f32.mrf.mxu3  ;;  %v1485_v29 = vpop.f32.mrf.mxu2 }
 0x400   : > { %1877 = vst [vmem:[%s3597_s11 + $0x170] sm:$0xff] %v1256_v38  ;;  %v1666_v13 = vpop.f32.mrf.mxu1 }
 0x401   : > { %1910 = vst [vmem:[%s3597_s11 + $0x278] sm:$0xff] %v1485_v29 }
 0x402   : > { %1927 = vst [vmem:[%s3597_s11 + $0x300] sm:$0xff] %v1666_v13 }
 0x404   : > { %2603 = vmatmul.msk.f32.gmra.mxu3 %vm922_vm0, %v857_v40 }
 0x407   : > { %v1259_v60 = vpop.f32.mrf.mxu3  ;;  %v1779_v63 = vpop.f32.mrf.mxu2 }
 0x408   : > { %1878 = vst [vmem:[%s3597_s11 + $0x178] sm:$0xff] %v1259_v60  ;;  %v1669_v57 = vpop.f32.mrf.mxu1 }
 0x409   : > { %1943 = vst [vmem:[%s3597_s11 + $0x380] sm:$0xff] %v1779_v63 }
 0x40a   : > { %1928 = vst [vmem:[%s3597_s11 + $0x308] sm:$0xff] %v1669_v57 }
 0x40f   : > { %v1553_v59 = vpop.f32.mrf.mxu3  ;;  %v1782_v61 = vpop.f32.mrf.mxu2 }
 0x410   : > { %1911 = vst [vmem:[%s3597_s11 + $0x280] sm:$0xff] %v1553_v59  ;;  %v1672_v5 = vpop.f32.mrf.mxu1 }
 0x411   : > { %1944 = vst [vmem:[%s3597_s11 + $0x388] sm:$0xff] %v1782_v61 }
 0x412   : > { %1929 = vst [vmem:[%s3597_s11 + $0x310] sm:$0xff] %v1672_v5 }
 0x417   : > { %v1556_v26 = vpop.f32.mrf.mxu3  ;;  %v1785_v25 = vpop.f32.mrf.mxu2 }
 0x418   : > { %1912 = vst [vmem:[%s3597_s11 + $0x288] sm:$0xff] %v1556_v26  ;;  %v1675_v24 = vpop.f32.mrf.mxu1 }
 0x419   : > { %1945 = vst [vmem:[%s3597_s11 + $0x390] sm:$0xff] %v1785_v25 }
 0x41a   : > { %1930 = vst [vmem:[%s3597_s11 + $0x318] sm:$0xff] %v1675_v24 }
 0x41f   : > { %v1559_v30 = vpop.f32.mrf.mxu3  ;;  %v1788_v23 = vpop.f32.mrf.mxu2 }
 0x420   : > { %1913 = vst [vmem:[%s3597_s11 + $0x290] sm:$0xff] %v1559_v30  ;;  %v1678_v15 = vpop.f32.mrf.mxu1 }
 0x421   : > { %1946 = vst [vmem:[%s3597_s11 + $0x398] sm:$0xff] %v1788_v23 }
 0x422   : > { %1931 = vst [vmem:[%s3597_s11 + $0x320] sm:$0xff] %v1678_v15 }
 0x427   : > { %v1562_v62 = vpop.f32.mrf.mxu3  ;;  %v1791_v7 = vpop.f32.mrf.mxu2 }
 0x428   : > { %1914 = vst [vmem:[%s3597_s11 + $0x298] sm:$0xff] %v1562_v62  ;;  %v1681_v36 = vpop.f32.mrf.mxu1 }
 0x429   : > { %1947 = vst [vmem:[%s3597_s11 + $0x3a0] sm:$0xff] %v1791_v7 }
 0x42a   : > { %1932 = vst [vmem:[%s3597_s11 + $0x328] sm:$0xff] %v1681_v36 }
 0x42f   : > { %v1565_v33 = vpop.f32.mrf.mxu3  ;;  %v1794_v34 = vpop.f32.mrf.mxu2 }
 0x430   : > { %1915 = vst [vmem:[%s3597_s11 + $0x2a0] sm:$0xff] %v1565_v33  ;;  %v1684_v1 = vpop.f32.mrf.mxu1 }
 0x431   : > { %1948 = vst [vmem:[%s3597_s11 + $0x3a8] sm:$0xff] %v1794_v34 }
 0x432   : > { %1933 = vst [vmem:[%s3597_s11 + $0x330] sm:$0xff] %v1684_v1 }
 0x437   : > { %v1568_v42 = vpop.f32.mrf.mxu3  ;;  %v1797_v28 = vpop.f32.mrf.mxu2 }
 0x438   : > { %1916 = vst [vmem:[%s3597_s11 + $0x2a8] sm:$0xff] %v1568_v42  ;;  %v1687_v37 = vpop.f32.mrf.mxu1 }
 0x439   : > { %1949 = vst [vmem:[%s3597_s11 + $0x3b0] sm:$0xff] %v1797_v28 }
 0x43a   : > { %1934 = vst [vmem:[%s3597_s11 + $0x338] sm:$0xff] %v1687_v37 }
 0x43f   : > { %v1571_v10 = vpop.f32.mrf.mxu3  ;;  %v1800_v31 = vpop.f32.mrf.mxu2 }
 0x440   : > { %1917 = vst [vmem:[%s3597_s11 + $0x2b0] sm:$0xff] %v1571_v10  ;;  %v1690_v17 = vpop.f32.mrf.mxu1 }
 0x441   : > { %1950 = vst [vmem:[%s3597_s11 + $0x3b8] sm:$0xff] %v1800_v31 }
 0x442   : > { %1935 = vst [vmem:[%s3597_s11 + $0x340] sm:$0xff] %v1690_v17 }
 0x447   : > { %v1574_v43 = vpop.f32.mrf.mxu3  ;;  %v1803_v54 = vpop.f32.mrf.mxu2 }
 0x448   : > { %1918 = vst [vmem:[%s3597_s11 + $0x2b8] sm:$0xff] %v1574_v43  ;;  %v1693_v27 = vpop.f32.mrf.mxu1 }
 0x449   : > { %1951 = vst [vmem:[%s3597_s11 + $0x3c0] sm:$0xff] %v1803_v54 }
 0x44a   : > { %1936 = vst [vmem:[%s3597_s11 + $0x348] sm:$0xff] %v1693_v27 }
 0x44f   : > { %v1577_v20 = vpop.f32.mrf.mxu3  ;;  %v1806_v3 = vpop.f32.mrf.mxu2 }
 0x450   : > { %1919 = vst [vmem:[%s3597_s11 + $0x2c0] sm:$0xff] %v1577_v20  ;;  %v1696_v45 = vpop.f32.mrf.mxu1 }
 0x451   : > { %1952 = vst [vmem:[%s3597_s11 + $0x3c8] sm:$0xff] %v1806_v3 }
 0x452   : > { %1937 = vst [vmem:[%s3597_s11 + $0x350] sm:$0xff] %v1696_v45 }
 0x457   : > { %v1580_v47 = vpop.f32.mrf.mxu3  ;;  %v1809_v46 = vpop.f32.mrf.mxu2 }
 0x458   : > { %1920 = vst [vmem:[%s3597_s11 + $0x2c8] sm:$0xff] %v1580_v47  ;;  %v1699_v58 = vpop.f32.mrf.mxu1 }
 0x459   : > { %1953 = vst [vmem:[%s3597_s11 + $0x3d0] sm:$0xff] %v1809_v46 }
 0x45a   : > { %1938 = vst [vmem:[%s3597_s11 + $0x358] sm:$0xff] %v1699_v58 }
 0x45f   : > { %v1583_v50 = vpop.f32.mrf.mxu3  ;;  %v1812_v39 = vpop.f32.mrf.mxu2 }
 0x460   : > { %1921 = vst [vmem:[%s3597_s11 + $0x2d0] sm:$0xff] %v1583_v50  ;;  %v1702_v22 = vpop.f32.mrf.mxu1 }
 0x461   : > { %1954 = vst [vmem:[%s3597_s11 + $0x3d8] sm:$0xff] %v1812_v39 }
 0x462   : > { %1939 = vst [vmem:[%s3597_s11 + $0x360] sm:$0xff] %v1702_v22 }
 0x467   : > { %v1586_v6 = vpop.f32.mrf.mxu3  ;;  %v1815_v52 = vpop.f32.mrf.mxu2 }
 0x468   : > { %1922 = vst [vmem:[%s3597_s11 + $0x2d8] sm:$0xff] %v1586_v6  ;;  %v1705_v48 = vpop.f32.mrf.mxu1 }
 0x469   : > { %1955 = vst [vmem:[%s3597_s11 + $0x3e0] sm:$0xff] %v1815_v52 }
 0x46a   : > { %1940 = vst [vmem:[%s3597_s11 + $0x368] sm:$0xff] %v1705_v48 }
 0x46f   : > { %v1589_v19 = vpop.f32.mrf.mxu3  ;;  %v1818_v11 = vpop.f32.mrf.mxu2 }
 0x470   : > { %1923 = vst [vmem:[%s3597_s11 + $0x2e0] sm:$0xff] %v1589_v19  ;;  %v1708_v9 = vpop.f32.mrf.mxu1 }
 0x471   : > { %1956 = vst [vmem:[%s3597_s11 + $0x3e8] sm:$0xff] %v1818_v11 }
 0x472   : > { %1941 = vst [vmem:[%s3597_s11 + $0x370] sm:$0xff] %v1708_v9 }
 0x477   : > { %v1592_v18 = vpop.f32.mrf.mxu3  ;;  %v1821_v56 = vpop.f32.mrf.mxu2 }
 0x478   : > { %1924 = vst [vmem:[%s3597_s11 + $0x2e8] sm:$0xff] %v1592_v18  ;;  %v1711_v4 = vpop.f32.mrf.mxu1 }
 0x479   : > { %1957 = vst [vmem:[%s3597_s11 + $0x3f0] sm:$0xff] %v1821_v56 }
 0x47a   : > { %1942 = vst [vmem:[%s3597_s11 + $0x378] sm:$0xff] %v1711_v4 }
 0x47f   : > { %v1595_v12 = vpop.f32.mrf.mxu3  ;;  %v1824_v41 = vpop.f32.mrf.mxu2 }
 0x480   : > { %1925 = vst [vmem:[%s3597_s11 + $0x2f0] sm:$0xff] %v1595_v12 }
 0x481   : > { %1958 = vst [vmem:[%s3597_s11 + $0x3f8] sm:$0xff] %v1824_v41 }
 0x487   : > { %v1598_v14 = vpop.f32.mrf.mxu3 }
 0x488   : > { %1926 = vst [vmem:[%s3597_s11 + $0x2f8] sm:$0xff] %v1598_v14 }
 0x489   : > { %s2641_s27 = sshll.u32 %s2962_s15, 7  ;;  %s2370_s28 = sshll.u32 %s3597_s11, 4  ;;  %s2371_s28 = int_to_ptr.vmem [resolvable:$true] %s2370_s28 }
 0x48a   : > { %s2359_s8 = scalar_lea.hbm %s3874_s3, %s2641_s27  ;;  %s2976_s25 = smov 2048  }
 0x48b   : > { %s2372_s19 = sshll.u32 %s2359_s8, 4  ;;  %2662 = sst [smem:[#allocation10]] (%p3093_p0), %s2976_s25  ;;  %s2373_s19 = int_to_ptr.hbm [resolvable:$true] %s2372_s19 }
 0x48c   : > { %s2977_s26 = smov 4096   ;;  %s2978_s23 = smov 16  }
 0x48d   : > { %2663 = sst [smem:[#allocation10 + $0x1]] (%p3093_p0), %s2977_s26  ;;  %s2979_s15 = smov 128  }
 0x48e   : > { %2664 = sst [smem:[#allocation10 + $0x2]] (%p3093_p0), %s2978_s23  ;;  %s2980_s29 = smov 8  }
 0x48f   : > { %2665 = sst [smem:[#allocation10 + $0x3]] (%p3093_p0), %s2979_s15  ;;  %s2981_s4 = smov [#allocation9]  }
 0x490   : > { %2666 = sst [smem:[#allocation10 + $0x4]] (%p3093_p0), %s2979_s15  ;;  %s2982_s9 = smov 0  }
 0x491   : > { %2667 = sst [smem:[#allocation10 + $0x5]] (%p3093_p0), %s2980_s29 }
 0x492   : > { %2668 = dma.general (%p3093_p0), %s2371_s28, 16384, %s2373_s19, %s2348_s20, %s2981_s4, [#allocation10], %s2982_s9, 0  }
 0x493 PF: > { %s2400_s6 = sand.u32 1, %s2950_s12   ;;  %p2682_p7 = pnand %p2501_p4, %p3097_p2 }
 0x494   : > { %s2401_s7 = scalar_lea.sflag [#allocation4], %s2400_s6 }
 0x495   : > { %p2683_p8 = pneg %p2682_p7 }
 0x497   : > { %2945 = dma.done.wait (%p2683_p8), %s2401_s7, 16384  }
 0x498   : > { %2947 = vsyncadd (%p2683_p8), %s2401_s7, 4294950912  ;;  %s20_s17 = sadd.s32 1, %s2970_s17   ;;  %s3888_s12 = smov %s2954_s13 }
 0x499   : > { %p17_p9 = scmp.ge.s32.totalorder %s20_s17, 4   ;;  %s3889_s13 = smov %s2958_s14 }
 0x49a   : > { %s3890_s14 = smov %s3054_s24  ;;  %s3891_s15 = smov %s2966_s16 }
 0x49b   : > { %s3892_s16 = smov %s3894_s18  ;;  %19 = sbr.rel (!%p17_p9) target bundleno = 7 (0x7), region = 107 }
 0x4a0   :  { %2407 = vsyncpa [#allocation3], 1 }
 0x4a1   :  { %2409 = vsyncpa [#allocation3 + $0x1], 1 }
 0x4a2   :  { %2410 = vsyncpa [#allocation6], 1 }
 0x4a3   :  { %2412 = vsyncpa [#allocation6 + $0x1], 1 }
 0x4a4   :  { %2413 = vsyncpa [#allocation4], 1 }
 0x4a5   :  { %2415 = vsyncpa [#allocation4 + $0x1], 1 }

</bundles_post_ra>
